<compile_context>
chip_gen: v5e
topology: v5e:2x2
jax: 0.10.0
libtpu: 0.0.40
codegen_flags: <defaults>
</compile_context>

<pallas_src>
import jax
import jax.numpy as jnp
from jax.experimental import pallas as pl
from jax.experimental.pallas import tpu as pltpu


# ----------------------------------------------------------------------------
# Input-projection kernel (hoisted out of the recurrence):
#   gi_f = X @ W_f + b_f ,  gi_b = X @ W_b + b_b
#   X: (M, E), W_*: (E, 3H), b_*: (1, 3H), gate order [r z n].
# Tiled over M; each output is written lane-dense from lane 0.
# ----------------------------------------------------------------------------
def input_proj_kernel(x_ref, wf_ref, wb_ref, bf_ref, bb_ref, of_ref, ob_ref):
    x = x_ref[...]
    of_ref[...] = (jnp.dot(x, wf_ref[...], preferred_element_type=jnp.float32)
                   + bf_ref[...]).astype(of_ref.dtype)
    ob_ref[...] = (jnp.dot(x, wb_ref[...], preferred_element_type=jnp.float32)
                   + bb_ref[...]).astype(ob_ref.dtype)


def _pick_row_tile(M, max_tile=512):
    limit = min(M, max_tile)
    for tm in range(limit, 0, -1):
        if M % tm == 0 and (tm % 8 == 0 or tm == M):
            return tm
    return M


def input_projection(x, w_f, w_b, b_f, b_b):
    M, E = x.shape
    N = w_f.shape[1]
    TM = _pick_row_tile(M)
    return pl.pallas_call(
        input_proj_kernel,
        out_shape=(jax.ShapeDtypeStruct((M, N), jnp.float32),
                   jax.ShapeDtypeStruct((M, N), jnp.float32)),
        grid_spec=pltpu.PrefetchScalarGridSpec(
            num_scalar_prefetch=0,
            grid=(M // TM,),
            in_specs=[
                pl.BlockSpec((TM, E), lambda i: (i, 0)),
                pl.BlockSpec((E, N), lambda i: (0, 0)),
                pl.BlockSpec((E, N), lambda i: (0, 0)),
                pl.BlockSpec((1, N), lambda i: (0, 0)),
                pl.BlockSpec((1, N), lambda i: (0, 0)),
            ],
            out_specs=(pl.BlockSpec((TM, N), lambda i: (i, 0)),
                       pl.BlockSpec((TM, N), lambda i: (i, 0))),
        ),
        compiler_params=pltpu.CompilerParams(
            dimension_semantics=("parallel",)),
    )(x, w_f, w_b, b_f, b_b)


# ----------------------------------------------------------------------------
# Fused bidirectional GRU kernel.
#   gi_f_ref / gi_b_ref : (TC, B, 3H)  pre-projected inputs, gates [r z n]
#                         (gi_b block is time-reversed via its index_map)
#   whh_ref             : (2, H, 3H)   fused hidden weights [dir]
#   bhn_ref             : (2, 1, H)    n-gate hidden bias   [dir]
#   wlf_ref / wlb_ref   : (H, H)       final Linear split (fwd / bwd halves)
#   bl_ref              : (1, H)
#   out_f_ref           : (TC, B, H)   forward output chunk  (block c)
#   out_b_ref           : (TC, B, H)   backward output chunk (block NC-1-c)
#   hid_ref             : (B, H)       projected final hidden (written last chunk)
#   hf_ref / hb_ref     : (B, H) VMEM  recurrent state carried across chunks
# PyTorch gate math:  n = tanh(gi_n + r*(h@Whh_n + bhh_n)); h' = (1-z)*n + z*h.
# The r/z hidden biases are pre-folded into gi.
# ----------------------------------------------------------------------------
def bigru_kernel(gi_f_ref, gi_b_ref, whh_ref, bhn_ref,
                 wlf_ref, wlb_ref, bl_ref,
                 out_f_ref, out_b_ref, hid_ref, hf_ref, hb_ref):
    c = pl.program_id(0)
    nc = pl.num_programs(0)
    TC = gi_f_ref.shape[0]
    B = hf_ref.shape[0]
    H = hf_ref.shape[1]

    @pl.when(c == 0)
    def _():
        hf_ref[...] = jnp.zeros_like(hf_ref)
        hb_ref[...] = jnp.zeros_like(hb_ref)

    # Hoist weights / biases out of the time loop (loaded once per grid step;
    # the n-gate bias is pre-broadcast so no broadcast_in_dim per unrolled step).
    whh_f = whh_ref[0]                                   # (H, 3H)
    whh_b = whh_ref[1]
    bhn_f = jnp.broadcast_to(bhn_ref[0], (B, H))         # (B, H)
    bhn_b = jnp.broadcast_to(bhn_ref[1], (B, H))

    def gru_step(gi, h, whh, bhn):
        # One fused MXU op for all three gates.
        gh = jnp.dot(h, whh, preferred_element_type=jnp.float32)   # (B, 3H)
        rz = jax.nn.sigmoid(gi[:, :2 * H] + gh[:, :2 * H])
        r = rz[:, :H]
        z = rz[:, H:]
        n = jnp.tanh(gi[:, 2 * H:] + r * (gh[:, 2 * H:] + bhn))
        return (1.0 - z) * n + z * h

    def body(s, carry):
        h_f, h_b = carry
        # forward direction: local time index s within chunk c
        h_f = gru_step(gi_f_ref[s], h_f, whh_f, bhn_f)
        out_f_ref[pl.ds(s, 1)] = h_f[None].astype(out_f_ref.dtype)
        # backward direction: position TC-1-s inside the (already reversed) block
        sb = TC - 1 - s
        h_b = gru_step(gi_b_ref[sb], h_b, whh_b, bhn_b)
        out_b_ref[pl.ds(sb, 1)] = h_b[None].astype(out_b_ref.dtype)
        return h_f, h_b

    h_f, h_b = jax.lax.fori_loop(0, TC, body, (hf_ref[...], hb_ref[...]),
                                 unroll=True)
    hf_ref[...] = h_f
    hb_ref[...] = h_b

    # Fused final Linear on [h_f ; h_b] -- only on the last chunk
    # (valid because the grid axis is sequential / "arbitrary").
    @pl.when(c == nc - 1)
    def _():
        hid = (jnp.dot(h_f, wlf_ref[...], preferred_element_type=jnp.float32)
               + jnp.dot(h_b, wlb_ref[...], preferred_element_type=jnp.float32)
               + bl_ref[...])
        hid_ref[...] = hid.astype(hid_ref.dtype)


def _pick_time_chunk(T, B, H, max_chunk=32, vmem_budget_bytes=8 * 1024 * 1024):
    # Double-buffered per-chunk traffic: 2 dirs * (3H in + H out) * 2 bufs * B * 4B.
    per_step = 2 * (3 * H + H) * 2 * B * 4
    cap = max(1, vmem_budget_bytes // max(per_step, 1))
    limit = max(1, min(T, max_chunk, cap))
    for tc in range(limit, 0, -1):
        if T % tc == 0:
            return tc
    return 1


def bigru(gi_f, gi_b, whh, bhn, w_lin_f, w_lin_b, b_lin, time_chunk):
    T, B, G3 = gi_f.shape
    H = b_lin.shape[1]
    TC = time_chunk
    NC = T // TC
    return pl.pallas_call(
        bigru_kernel,
        out_shape=(jax.ShapeDtypeStruct((T, B, H), jnp.float32),   # out_f
                   jax.ShapeDtypeStruct((T, B, H), jnp.float32),   # out_b
                   jax.ShapeDtypeStruct((B, H), jnp.float32)),     # hidden
        grid_spec=pltpu.PrefetchScalarGridSpec(
            num_scalar_prefetch=0,
            grid=(NC,),
            in_specs=[
                pl.BlockSpec((TC, B, G3), lambda c: (c, 0, 0)),           # gi_f chunk
                pl.BlockSpec((TC, B, G3), lambda c: (NC - 1 - c, 0, 0)),  # gi_b reversed
                pl.BlockSpec((2, H, 3 * H), lambda c: (0, 0, 0)),         # W_hh fused
                pl.BlockSpec((2, 1, H), lambda c: (0, 0, 0)),             # b_hh (n gate)
                pl.BlockSpec((H, H), lambda c: (0, 0)),                   # W_lin fwd half
                pl.BlockSpec((H, H), lambda c: (0, 0)),                   # W_lin bwd half
                pl.BlockSpec((1, H), lambda c: (0, 0)),                   # b_lin
            ],
            out_specs=(
                pl.BlockSpec((TC, B, H), lambda c: (c, 0, 0)),            # out_f chunk
                pl.BlockSpec((TC, B, H), lambda c: (NC - 1 - c, 0, 0)),   # out_b chunk
                pl.BlockSpec((B, H), lambda c: (0, 0)),                   # hidden (last)
            ),
            scratch_shapes=[pltpu.VMEM((B, H), jnp.float32),
                            pltpu.VMEM((B, H), jnp.float32)],
        ),
        compiler_params=pltpu.CompilerParams(
            dimension_semantics=("arbitrary",),         # recurrence -> sequential grid
            vmem_limit_bytes=32 * 1024 * 1024),         # legal on v5e/v6e/v7x
    )(gi_f, gi_b, whh, bhn, w_lin_f, w_lin_b, b_lin)


# ----------------------------------------------------------------------------
# Full Encoder forward (bidirectional=True path of the PyTorch module).
# ----------------------------------------------------------------------------
@jax.jit
def encoder_forward(x_ids, params):
    B, T = x_ids.shape
    H = params["b_lin"].shape[1]
    E = params["embedding"].shape[1]

    # TODO(synk): embedding lookup is a gather; kept as plain-JAX glue.
    # Gather directly into time-major (T, B, E): no big-tensor transpose.
    emb_tbe = jnp.take(params["embedding"], x_ids.T, axis=0)        # (T, B, E)

    # Hoisted input projection (both directions), tiled over T*B rows.
    gi_f2, gi_b2 = input_projection(emb_tbe.reshape(T * B, E),
                                    params["w_ih_f"], params["w_ih_b"],
                                    params["b_gi_f"], params["b_gi_b"])
    gi_f = gi_f2.reshape(T, B, 3 * H)        # contiguous reshape: free
    gi_b = gi_b2.reshape(T, B, 3 * H)

    tc = _pick_time_chunk(T, B, H)
    out_f, out_b, hidden = bigru(gi_f, gi_b, params["whh"], params["bhn"],
                                 params["w_lin_f"], params["w_lin_b"],
                                 params["b_lin"], time_chunk=tc)

    # TODO(synk): drop this concat+transpose if the consumer accepts time-major
    # per-direction outputs; kept to match the PyTorch batch-first (B, T, 2H).
    output = jnp.transpose(jnp.concatenate([out_f, out_b], axis=-1), (1, 0, 2))
    return output, hidden


# ----------------------------------------------------------------------------
# Pure-JAX reference (same parameter layout) for verification.
# ----------------------------------------------------------------------------
def encoder_ref(x_ids, params):
    H = params["b_lin"].shape[1]
    emb_tbe = jnp.take(params["embedding"], x_ids.T, axis=0)        # (T, B, E)
    B = emb_tbe.shape[1]

    def run_direction(w_ih, b_gi, whh, bhn, seq):
        def step(h, x_t):
            gi = x_t @ w_ih + b_gi                     # r/z hidden biases pre-folded
            gh = h @ whh
            r = jax.nn.sigmoid(gi[:, :H] + gh[:, :H])
            z = jax.nn.sigmoid(gi[:, H:2 * H] + gh[:, H:2 * H])
            n = jnp.tanh(gi[:, 2 * H:] + r * (gh[:, 2 * H:] + bhn))
            h_new = (1.0 - z) * n + z * h
            return h_new, h_new
        h0 = jnp.zeros((B, H), jnp.float32)
        return jax.lax.scan(step, h0, seq)

    h_f, out_f = run_direction(params["w_ih_f"], params["b_gi_f"],
                               params["whh"][0], params["bhn"][0], emb_tbe)
    h_b, out_b_rev = run_direction(params["w_ih_b"], params["b_gi_b"],
                                   params["whh"][1], params["bhn"][1], emb_tbe[::-1])
    out_b = out_b_rev[::-1]
    output = jnp.transpose(jnp.concatenate([out_f, out_b], axis=-1), (1, 0, 2))
    hidden = h_f @ params["w_lin_f"] + h_b @ params["w_lin_b"] + params["b_lin"]
    return output, hidden


# ----------------------------------------------------------------------------
# Deterministic parameter init (shapes from the nn.Module __init__).
# Weights are stored pre-transposed / gate-packed [r z n] for the kernel layout.
# When converting real PyTorch weights: b_gi = b_ih + [b_hh_r, b_hh_z, 0] (the
# n-gate hidden bias stays separate in "bhn" because it is multiplied by r).
# ----------------------------------------------------------------------------
def init_params(key, vocab_size, hidden_dim, embedding_dim):
    H, E = hidden_dim, embedding_dim
    k = 1.0 / jnp.sqrt(jnp.float32(H))
    ks = jax.random.split(key, 10)
    u = lambda kk, shape: jax.random.uniform(kk, shape, jnp.float32, -k, k)
    return {
        "embedding": jax.random.normal(ks[0], (vocab_size, E), jnp.float32),
        # input-projection weights, pre-transposed, gates [r z n]
        "w_ih_f": u(ks[1], (E, 3 * H)),
        "w_ih_b": u(ks[2], (E, 3 * H)),
        # input bias with r/z hidden biases conceptually folded in
        "b_gi_f": u(ks[3], (1, 3 * H)),
        "b_gi_b": u(ks[4], (1, 3 * H)),
        # fused hidden-projection weights (H, 3H) per direction, gates [r z n]
        "whh": u(ks[5], (2, H, 3 * H)),
        # n-gate hidden bias per direction
        "bhn": u(ks[6], (2, 1, H)),
        # final Linear (in = 2H, out = H), split into fwd / bwd halves, pre-transposed
        "w_lin_f": u(ks[7], (H, H)),
        "w_lin_b": u(ks[8], (H, H)),
        "b_lin": u(ks[9], (1, H)),
    }


if __name__ == "__main__":
    vocab_size, hidden_dim, embedding_dim = 50, 32, 16
    B, T = 2, 8

    key = jax.random.PRNGKey(0)
    pkey, xkey = jax.random.split(key)
    params = init_params(pkey, vocab_size, hidden_dim, embedding_dim)
    x_ids = jax.random.randint(xkey, (B, T), 0, vocab_size, dtype=jnp.int32)

    output, hidden = encoder_forward(x_ids, params)
    jax.block_until_ready((output, hidden))

    assert output.shape == (B, T, 2 * hidden_dim), output.shape
    assert hidden.shape == (B, hidden_dim), hidden.shape

    out_ref, hid_ref = encoder_ref(x_ids, params)
    assert jnp.allclose(output, out_ref, atol=1e-3, rtol=1e-3), \
        float(jnp.max(jnp.abs(output - out_ref)))
    assert jnp.allclose(hidden, hid_ref, atol=1e-3, rtol=1e-3), \
        float(jnp.max(jnp.abs(hidden - hid_ref)))

    print("KERNEL_OK")
</pallas_src>

<mosaic_0001>
module attributes {stable_mosaic.version = 11 : i64} {
  func.func @input_proj_kernel(%arg0: i32, %arg1: memref<16x16xf32, #tpu.memory_space<vmem>>, %arg2: memref<16x96xf32, #tpu.memory_space<vmem>>, %arg3: memref<16x96xf32, #tpu.memory_space<vmem>>, %arg4: memref<1x96xf32, #tpu.memory_space<vmem>>, %arg5: memref<1x96xf32, #tpu.memory_space<vmem>>, %arg6: memref<16x96xf32, #tpu.memory_space<vmem>>, %arg7: memref<16x96xf32, #tpu.memory_space<vmem>>) attributes {dimension_semantics = [#tpu.dimension_semantics<parallel>], iteration_bounds = array<i64: 1>, scalar_prefetch = 0 : i64, scratch_operands = 0 : i64, tpu.core_type = #tpu.core_type<tc>, window_params = [{transform_indices = @transform_0, window_bounds = array<i64: 16, 16>}, {pipeline_mode = #tpu.pipeline_mode<synchronous>, transform_indices = @transform_1, window_bounds = array<i64: 16, 96>}, {pipeline_mode = #tpu.pipeline_mode<synchronous>, transform_indices = @transform_2, window_bounds = array<i64: 16, 96>}, {pipeline_mode = #tpu.pipeline_mode<synchronous>, transform_indices = @transform_3, window_bounds = array<i64: 1, 96>}, {pipeline_mode = #tpu.pipeline_mode<synchronous>, transform_indices = @transform_4, window_bounds = array<i64: 1, 96>}, {transform_indices = @transform_5, window_bounds = array<i64: 16, 96>}, {transform_indices = @transform_6, window_bounds = array<i64: 16, 96>}]} {
    %c0 = arith.constant 0 : index
    %c0_0 = arith.constant 0 : index
    %0 = vector.load %arg1[%c0, %c0_0] : memref<16x16xf32, #tpu.memory_space<vmem>>, vector<16x16xf32>
    %c0_1 = arith.constant 0 : index
    %c0_2 = arith.constant 0 : index
    %1 = vector.load %arg2[%c0_1, %c0_2] : memref<16x96xf32, #tpu.memory_space<vmem>>, vector<16x96xf32>
    %cst = arith.constant dense<0.000000e+00> : vector<16x96xf32>
    %2 = tpu.matmul %0, %1, %cst {dimension_numbers = #tpu.dot_dimension_numbers<[1], [0], [0], [1], [0, 0, 1, 1], [], []>} : vector<16x16xf32>, vector<16x96xf32>, vector<16x96xf32> -> vector<16x96xf32>
    %c0_3 = arith.constant 0 : index
    %c0_4 = arith.constant 0 : index
    %3 = vector.load %arg4[%c0_3, %c0_4] : memref<1x96xf32, #tpu.memory_space<vmem>>, vector<1x96xf32>
    %4 = vector.broadcast %3 : vector<1x96xf32> to vector<16x96xf32>
    %5 = arith.addf %2, %4 : vector<16x96xf32>
    %c0_5 = arith.constant 0 : index
    %c0_6 = arith.constant 0 : index
    %6 = vector.load %arg6[%c0_5, %c0_6] : memref<16x96xf32, #tpu.memory_space<vmem>>, vector<16x96xf32>
    tpu.vector_store %arg6[%c0_5, %c0_6], %5 {strides = array<i32>} : memref<16x96xf32, #tpu.memory_space<vmem>>, vector<16x96xf32>,
    %c0_7 = arith.constant 0 : index
    %c0_8 = arith.constant 0 : index
    %7 = vector.load %arg3[%c0_7, %c0_8] : memref<16x96xf32, #tpu.memory_space<vmem>>, vector<16x96xf32>
    %cst_9 = arith.constant dense<0.000000e+00> : vector<16x96xf32>
    %8 = tpu.matmul %0, %7, %cst_9 {dimension_numbers = #tpu.dot_dimension_numbers<[1], [0], [0], [1], [0, 0, 1, 1], [], []>} : vector<16x16xf32>, vector<16x96xf32>, vector<16x96xf32> -> vector<16x96xf32>
    %c0_10 = arith.constant 0 : index
    %c0_11 = arith.constant 0 : index
    %9 = vector.load %arg5[%c0_10, %c0_11] : memref<1x96xf32, #tpu.memory_space<vmem>>, vector<1x96xf32>
    %10 = vector.broadcast %9 : vector<1x96xf32> to vector<16x96xf32>
    %11 = arith.addf %8, %10 : vector<16x96xf32>
    %c0_12 = arith.constant 0 : index
    %c0_13 = arith.constant 0 : index
    %12 = vector.load %arg7[%c0_12, %c0_13] : memref<16x96xf32, #tpu.memory_space<vmem>>, vector<16x96xf32>
    tpu.vector_store %arg7[%c0_12, %c0_13], %11 {strides = array<i32>} : memref<16x96xf32, #tpu.memory_space<vmem>>, vector<16x96xf32>,
    return
  }
  func.func @transform_0(%arg0: i32) -> (i32, i32) {
    %c0_i32 = arith.constant 0 : i32
    %c0_i32_0 = arith.constant 0 : i32
    return %arg0, %c0_i32 : i32, i32
  }
  func.func @transform_1(%arg0: i32) -> (i32, i32) {
    %c0_i32 = arith.constant 0 : i32
    %c0_i32_0 = arith.constant 0 : i32
    %c0_i32_1 = arith.constant 0 : i32
    return %c0_i32, %c0_i32_0 : i32, i32
  }
  func.func @transform_2(%arg0: i32) -> (i32, i32) {
    %c0_i32 = arith.constant 0 : i32
    %c0_i32_0 = arith.constant 0 : i32
    %c0_i32_1 = arith.constant 0 : i32
    return %c0_i32, %c0_i32_0 : i32, i32
  }
  func.func @transform_3(%arg0: i32) -> (i32, i32) {
    %c0_i32 = arith.constant 0 : i32
    %c0_i32_0 = arith.constant 0 : i32
    %c0_i32_1 = arith.constant 0 : i32
    return %c0_i32, %c0_i32_0 : i32, i32
  }
  func.func @transform_4(%arg0: i32) -> (i32, i32) {
    %c0_i32 = arith.constant 0 : i32
    %c0_i32_0 = arith.constant 0 : i32
    %c0_i32_1 = arith.constant 0 : i32
    return %c0_i32, %c0_i32_0 : i32, i32
  }
  func.func @transform_5(%arg0: i32) -> (i32, i32) {
    %c0_i32 = arith.constant 0 : i32
    %c0_i32_0 = arith.constant 0 : i32
    return %arg0, %c0_i32 : i32, i32
  }
  func.func @transform_6(%arg0: i32) -> (i32, i32) {
    %c0_i32 = arith.constant 0 : i32
    %c0_i32_0 = arith.constant 0 : i32
    return %arg0, %c0_i32 : i32, i32
  }
}

module attributes {stable_mosaic.version = 11 : i64} {
  func.func @bigru_kernel(%arg0: i32, %arg1: memref<8x2x96xf32, #tpu.memory_space<vmem>>, %arg2: memref<8x2x96xf32, #tpu.memory_space<vmem>>, %arg3: memref<2x32x96xf32, #tpu.memory_space<vmem>>, %arg4: memref<2x1x32xf32, #tpu.memory_space<vmem>>, %arg5: memref<32x32xf32, #tpu.memory_space<vmem>>, %arg6: memref<32x32xf32, #tpu.memory_space<vmem>>, %arg7: memref<1x32xf32, #tpu.memory_space<vmem>>, %arg8: memref<8x2x32xf32, #tpu.memory_space<vmem>>, %arg9: memref<8x2x32xf32, #tpu.memory_space<vmem>>, %arg10: memref<2x32xf32, #tpu.memory_space<vmem>>, %arg11: memref<2x32xf32, #tpu.memory_space<vmem>>, %arg12: memref<2x32xf32, #tpu.memory_space<vmem>>) attributes {dimension_semantics = [#tpu.dimension_semantics<arbitrary>], iteration_bounds = array<i64: 1>, scalar_prefetch = 0 : i64, scratch_operands = 2 : i64, tpu.core_type = #tpu.core_type<tc>, window_params = [{transform_indices = @transform_0, window_bounds = array<i64: 8, 2, 96>}, {transform_indices = @transform_1, window_bounds = array<i64: 8, 2, 96>}, {pipeline_mode = #tpu.pipeline_mode<synchronous>, transform_indices = @transform_2, window_bounds = array<i64: 2, 32, 96>}, {pipeline_mode = #tpu.pipeline_mode<synchronous>, transform_indices = @transform_3, window_bounds = array<i64: 2, 1, 32>}, {pipeline_mode = #tpu.pipeline_mode<synchronous>, transform_indices = @transform_4, window_bounds = array<i64: 32, 32>}, {pipeline_mode = #tpu.pipeline_mode<synchronous>, transform_indices = @transform_5, window_bounds = array<i64: 32, 32>}, {pipeline_mode = #tpu.pipeline_mode<synchronous>, transform_indices = @transform_6, window_bounds = array<i64: 1, 32>}, {transform_indices = @transform_7, window_bounds = array<i64: 8, 2, 32>}, {transform_indices = @transform_8, window_bounds = array<i64: 8, 2, 32>}, {pipeline_mode = #tpu.pipeline_mode<synchronous>, transform_indices = @transform_9, window_bounds = array<i64: 2, 32>}]} {
    %c0_i32 = arith.constant 0 : i32
    %0 = arith.cmpi eq, %arg0, %c0_i32 : i32
    %1 = arith.extui %0 : i1 to i32
    %c0_i32_0 = arith.constant 0 : i32
    %2 = arith.cmpi ne, %1, %c0_i32_0 : i32
    scf.if %2 {
      %cst_141 = arith.constant 0.000000e+00 : f32
      %478 = vector.broadcast %cst_141 : f32 to vector<2x32xf32>
      %c0_142 = arith.constant 0 : index
      %c0_143 = arith.constant 0 : index
      %479 = vector.load %arg11[%c0_142, %c0_143] : memref<2x32xf32, #tpu.memory_space<vmem>>, vector<2x32xf32>
      tpu.vector_store %arg11[%c0_142, %c0_143], %478 {strides = array<i32>} : memref<2x32xf32, #tpu.memory_space<vmem>>, vector<2x32xf32>,
      %cst_144 = arith.constant 0.000000e+00 : f32
      %480 = vector.broadcast %cst_144 : f32 to vector<2x32xf32>
      %c0_145 = arith.constant 0 : index
      %c0_146 = arith.constant 0 : index
      %481 = vector.load %arg12[%c0_145, %c0_146] : memref<2x32xf32, #tpu.memory_space<vmem>>, vector<2x32xf32>
      tpu.vector_store %arg12[%c0_145, %c0_146], %480 {strides = array<i32>} : memref<2x32xf32, #tpu.memory_space<vmem>>, vector<2x32xf32>,
    } else {
    }
    %c0 = arith.constant 0 : index
    %c0_1 = arith.constant 0 : index
    %c0_2 = arith.constant 0 : index
    %3 = vector.load %arg3[%c0, %c0_1, %c0_2] : memref<2x32x96xf32, #tpu.memory_space<vmem>>, vector<1x32x96xf32>
    %4 = vector.shape_cast %3 : vector<1x32x96xf32> to vector<32x96xf32>
    %c1 = arith.constant 1 : index
    %c0_3 = arith.constant 0 : index
    %c0_4 = arith.constant 0 : index
    %5 = vector.load %arg3[%c1, %c0_3, %c0_4] : memref<2x32x96xf32, #tpu.memory_space<vmem>>, vector<1x32x96xf32>
    %6 = vector.shape_cast %5 : vector<1x32x96xf32> to vector<32x96xf32>
    %c0_5 = arith.constant 0 : index
    %c0_6 = arith.constant 0 : index
    %c0_7 = arith.constant 0 : index
    %7 = vector.load %arg4[%c0_5, %c0_6, %c0_7] : memref<2x1x32xf32, #tpu.memory_space<vmem>>, vector<1x1x32xf32>
    %8 = vector.shape_cast %7 : vector<1x1x32xf32> to vector<1x32xf32>
    %9 = vector.shape_cast %8 : vector<1x32xf32> to vector<1x32xf32>
    %10 = vector.broadcast %9 : vector<1x32xf32> to vector<2x32xf32>
    %c1_8 = arith.constant 1 : index
    %c0_9 = arith.constant 0 : index
    %c0_10 = arith.constant 0 : index
    %11 = vector.load %arg4[%c1_8, %c0_9, %c0_10] : memref<2x1x32xf32, #tpu.memory_space<vmem>>, vector<1x1x32xf32>
    %12 = vector.shape_cast %11 : vector<1x1x32xf32> to vector<1x32xf32>
    %13 = vector.shape_cast %12 : vector<1x32xf32> to vector<1x32xf32>
    %14 = vector.broadcast %13 : vector<1x32xf32> to vector<2x32xf32>
    %c0_11 = arith.constant 0 : index
    %c0_12 = arith.constant 0 : index
    %15 = vector.load %arg11[%c0_11, %c0_12] : memref<2x32xf32, #tpu.memory_space<vmem>>, vector<2x32xf32>
    %c0_13 = arith.constant 0 : index
    %c0_14 = arith.constant 0 : index
    %16 = vector.load %arg12[%c0_13, %c0_14] : memref<2x32xf32, #tpu.memory_space<vmem>>, vector<2x32xf32>
    %c0_i32_15 = arith.constant 0 : i32
    %17 = arith.index_cast %c0_i32_15 : i32 to index
    %c0_16 = arith.constant 0 : index
    %c0_17 = arith.constant 0 : index
    %18 = vector.load %arg1[%17, %c0_16, %c0_17] : memref<8x2x96xf32, #tpu.memory_space<vmem>>, vector<1x2x96xf32>
    %19 = vector.shape_cast %18 : vector<1x2x96xf32> to vector<2x96xf32>
    %cst = arith.constant dense<0.000000e+00> : vector<2x96xf32>
    %20 = tpu.matmul %15, %4, %cst {dimension_numbers = #tpu.dot_dimension_numbers<[1], [0], [0], [1], [0, 0, 1, 1], [], []>} : vector<2x32xf32>, vector<32x96xf32>, vector<2x96xf32> -> vector<2x96xf32>
    %21 = vector.extract_strided_slice %19 {offsets = [0, 0], sizes = [2, 64], strides = [1, 1]} : vector<2x96xf32> to vector<2x64xf32>
    %22 = vector.extract_strided_slice %20 {offsets = [0, 0], sizes = [2, 64], strides = [1, 1]} : vector<2x96xf32> to vector<2x64xf32>
    %23 = arith.addf %21, %22 : vector<2x64xf32>
    %24 = arith.negf %23 : vector<2x64xf32>
    %25 = math.exp %24 : vector<2x64xf32>
    %cst_18 = arith.constant 1.000000e+00 : f32
    %26 = vector.broadcast %cst_18 : f32 to vector<2x64xf32>
    %27 = arith.addf %26, %25 : vector<2x64xf32>
    %28 = arith.divf %26, %27 : vector<2x64xf32>
    %29 = vector.extract_strided_slice %28 {offsets = [0, 0], sizes = [2, 32], strides = [1, 1]} : vector<2x64xf32> to vector<2x32xf32>
    %30 = vector.extract_strided_slice %28 {offsets = [0, 32], sizes = [2, 32], strides = [1, 1]} : vector<2x64xf32> to vector<2x32xf32>
    %31 = vector.extract_strided_slice %19 {offsets = [0, 64], sizes = [2, 32], strides = [1, 1]} : vector<2x96xf32> to vector<2x32xf32>
    %32 = vector.extract_strided_slice %20 {offsets = [0, 64], sizes = [2, 32], strides = [1, 1]} : vector<2x96xf32> to vector<2x32xf32>
    %33 = arith.addf %32, %10 : vector<2x32xf32>
    %34 = arith.mulf %29, %33 : vector<2x32xf32>
    %35 = arith.addf %31, %34 : vector<2x32xf32>
    %36 = math.tanh %35 : vector<2x32xf32>
    %cst_19 = arith.constant 1.000000e+00 : f32
    %37 = vector.broadcast %cst_19 : f32 to vector<2x32xf32>
    %38 = arith.subf %37, %30 : vector<2x32xf32>
    %39 = arith.mulf %38, %36 : vector<2x32xf32>
    %40 = arith.mulf %30, %15 : vector<2x32xf32>
    %41 = arith.addf %39, %40 : vector<2x32xf32>
    %42 = vector.shape_cast %41 : vector<2x32xf32> to vector<1x2x32xf32>
    %43 = arith.index_cast %c0_i32_15 : i32 to index
    %c0_20 = arith.constant 0 : index
    %c0_21 = arith.constant 0 : index
    %44 = vector.load %arg8[%43, %c0_20, %c0_21] : memref<8x2x32xf32, #tpu.memory_space<vmem>>, vector<1x2x32xf32>
    tpu.vector_store %arg8[%43, %c0_20, %c0_21], %42 {strides = array<i32>} : memref<8x2x32xf32, #tpu.memory_space<vmem>>, vector<1x2x32xf32>,
    %c7_i32 = arith.constant 7 : i32
    %45 = arith.subi %c7_i32, %c0_i32_15 : i32
    %46 = arith.index_cast %45 : i32 to index
    %c0_22 = arith.constant 0 : index
    %c0_23 = arith.constant 0 : index
    %47 = vector.load %arg2[%46, %c0_22, %c0_23] : memref<8x2x96xf32, #tpu.memory_space<vmem>>, vector<1x2x96xf32>
    %48 = vector.shape_cast %47 : vector<1x2x96xf32> to vector<2x96xf32>
    %cst_24 = arith.constant dense<0.000000e+00> : vector<2x96xf32>
    %49 = tpu.matmul %16, %6, %cst_24 {dimension_numbers = #tpu.dot_dimension_numbers<[1], [0], [0], [1], [0, 0, 1, 1], [], []>} : vector<2x32xf32>, vector<32x96xf32>, vector<2x96xf32> -> vector<2x96xf32>
    %50 = vector.extract_strided_slice %48 {offsets = [0, 0], sizes = [2, 64], strides = [1, 1]} : vector<2x96xf32> to vector<2x64xf32>
    %51 = vector.extract_strided_slice %49 {offsets = [0, 0], sizes = [2, 64], strides = [1, 1]} : vector<2x96xf32> to vector<2x64xf32>
    %52 = arith.addf %50, %51 : vector<2x64xf32>
    %53 = arith.negf %52 : vector<2x64xf32>
    %54 = math.exp %53 : vector<2x64xf32>
    %cst_25 = arith.constant 1.000000e+00 : f32
    %55 = vector.broadcast %cst_25 : f32 to vector<2x64xf32>
    %56 = arith.addf %55, %54 : vector<2x64xf32>
    %57 = arith.divf %55, %56 : vector<2x64xf32>
    %58 = vector.extract_strided_slice %57 {offsets = [0, 0], sizes = [2, 32], strides = [1, 1]} : vector<2x64xf32> to vector<2x32xf32>
    %59 = vector.extract_strided_slice %57 {offsets = [0, 32], sizes = [2, 32], strides = [1, 1]} : vector<2x64xf32> to vector<2x32xf32>
    %60 = vector.extract_strided_slice %48 {offsets = [0, 64], sizes = [2, 32], strides = [1, 1]} : vector<2x96xf32> to vector<2x32xf32>
    %61 = vector.extract_strided_slice %49 {offsets = [0, 64], sizes = [2, 32], strides = [1, 1]} : vector<2x96xf32> to vector<2x32xf32>
    %62 = arith.addf %61, %14 : vector<2x32xf32>
    %63 = arith.mulf %58, %62 : vector<2x32xf32>
    %64 = arith.addf %60, %63 : vector<2x32xf32>
    %65 = math.tanh %64 : vector<2x32xf32>
    %cst_26 = arith.constant 1.000000e+00 : f32
    %66 = vector.broadcast %cst_26 : f32 to vector<2x32xf32>
    %67 = arith.subf %66, %59 : vector<2x32xf32>
    %68 = arith.mulf %67, %65 : vector<2x32xf32>
    %69 = arith.mulf %59, %16 : vector<2x32xf32>
    %70 = arith.addf %68, %69 : vector<2x32xf32>
    %71 = vector.shape_cast %70 : vector<2x32xf32> to vector<1x2x32xf32>
    %72 = arith.index_cast %45 : i32 to index
    %c0_27 = arith.constant 0 : index
    %c0_28 = arith.constant 0 : index
    %73 = vector.load %arg9[%72, %c0_27, %c0_28] : memref<8x2x32xf32, #tpu.memory_space<vmem>>, vector<1x2x32xf32>
    tpu.vector_store %arg9[%72, %c0_27, %c0_28], %71 {strides = array<i32>} : memref<8x2x32xf32, #tpu.memory_space<vmem>>, vector<1x2x32xf32>,
    %c1_i32 = arith.constant 1 : i32
    %74 = arith.index_cast %c1_i32 : i32 to index
    %c0_29 = arith.constant 0 : index
    %c0_30 = arith.constant 0 : index
    %75 = vector.load %arg1[%74, %c0_29, %c0_30] : memref<8x2x96xf32, #tpu.memory_space<vmem>>, vector<1x2x96xf32>
    %76 = vector.shape_cast %75 : vector<1x2x96xf32> to vector<2x96xf32>
    %cst_31 = arith.constant dense<0.000000e+00> : vector<2x96xf32>
    %77 = tpu.matmul %41, %4, %cst_31 {dimension_numbers = #tpu.dot_dimension_numbers<[1], [0], [0], [1], [0, 0, 1, 1], [], []>} : vector<2x32xf32>, vector<32x96xf32>, vector<2x96xf32> -> vector<2x96xf32>
    %78 = vector.extract_strided_slice %76 {offsets = [0, 0], sizes = [2, 64], strides = [1, 1]} : vector<2x96xf32> to vector<2x64xf32>
    %79 = vector.extract_strided_slice %77 {offsets = [0, 0], sizes = [2, 64], strides = [1, 1]} : vector<2x96xf32> to vector<2x64xf32>
    %80 = arith.addf %78, %79 : vector<2x64xf32>
    %81 = arith.negf %80 : vector<2x64xf32>
    %82 = math.exp %81 : vector<2x64xf32>
    %cst_32 = arith.constant 1.000000e+00 : f32
    %83 = vector.broadcast %cst_32 : f32 to vector<2x64xf32>
    %84 = arith.addf %83, %82 : vector<2x64xf32>
    %85 = arith.divf %83, %84 : vector<2x64xf32>
    %86 = vector.extract_strided_slice %85 {offsets = [0, 0], sizes = [2, 32], strides = [1, 1]} : vector<2x64xf32> to vector<2x32xf32>
    %87 = vector.extract_strided_slice %85 {offsets = [0, 32], sizes = [2, 32], strides = [1, 1]} : vector<2x64xf32> to vector<2x32xf32>
    %88 = vector.extract_strided_slice %76 {offsets = [0, 64], sizes = [2, 32], strides = [1, 1]} : vector<2x96xf32> to vector<2x32xf32>
    %89 = vector.extract_strided_slice %77 {offsets = [0, 64], sizes = [2, 32], strides = [1, 1]} : vector<2x96xf32> to vector<2x32xf32>
    %90 = arith.addf %89, %10 : vector<2x32xf32>
    %91 = arith.mulf %86, %90 : vector<2x32xf32>
    %92 = arith.addf %88, %91 : vector<2x32xf32>
    %93 = math.tanh %92 : vector<2x32xf32>
    %cst_33 = arith.constant 1.000000e+00 : f32
    %94 = vector.broadcast %cst_33 : f32 to vector<2x32xf32>
    %95 = arith.subf %94, %87 : vector<2x32xf32>
    %96 = arith.mulf %95, %93 : vector<2x32xf32>
    %97 = arith.mulf %87, %41 : vector<2x32xf32>
    %98 = arith.addf %96, %97 : vector<2x32xf32>
    %99 = vector.shape_cast %98 : vector<2x32xf32> to vector<1x2x32xf32>
    %100 = arith.index_cast %c1_i32 : i32 to index
    %c0_34 = arith.constant 0 : index
    %c0_35 = arith.constant 0 : index
    %101 = vector.load %arg8[%100, %c0_34, %c0_35] : memref<8x2x32xf32, #tpu.memory_space<vmem>>, vector<1x2x32xf32>
    tpu.vector_store %arg8[%100, %c0_34, %c0_35], %99 {strides = array<i32>} : memref<8x2x32xf32, #tpu.memory_space<vmem>>, vector<1x2x32xf32>,
    %c7_i32_36 = arith.constant 7 : i32
    %102 = arith.subi %c7_i32_36, %c1_i32 : i32
    %103 = arith.index_cast %102 : i32 to index
    %c0_37 = arith.constant 0 : index
    %c0_38 = arith.constant 0 : index
    %104 = vector.load %arg2[%103, %c0_37, %c0_38] : memref<8x2x96xf32, #tpu.memory_space<vmem>>, vector<1x2x96xf32>
    %105 = vector.shape_cast %104 : vector<1x2x96xf32> to vector<2x96xf32>
    %cst_39 = arith.constant dense<0.000000e+00> : vector<2x96xf32>
    %106 = tpu.matmul %70, %6, %cst_39 {dimension_numbers = #tpu.dot_dimension_numbers<[1], [0], [0], [1], [0, 0, 1, 1], [], []>} : vector<2x32xf32>, vector<32x96xf32>, vector<2x96xf32> -> vector<2x96xf32>
    %107 = vector.extract_strided_slice %105 {offsets = [0, 0], sizes = [2, 64], strides = [1, 1]} : vector<2x96xf32> to vector<2x64xf32>
    %108 = vector.extract_strided_slice %106 {offsets = [0, 0], sizes = [2, 64], strides = [1, 1]} : vector<2x96xf32> to vector<2x64xf32>
    %109 = arith.addf %107, %108 : vector<2x64xf32>
    %110 = arith.negf %109 : vector<2x64xf32>
    %111 = math.exp %110 : vector<2x64xf32>
    %cst_40 = arith.constant 1.000000e+00 : f32
    %112 = vector.broadcast %cst_40 : f32 to vector<2x64xf32>
    %113 = arith.addf %112, %111 : vector<2x64xf32>
    %114 = arith.divf %112, %113 : vector<2x64xf32>
    %115 = vector.extract_strided_slice %114 {offsets = [0, 0], sizes = [2, 32], strides = [1, 1]} : vector<2x64xf32> to vector<2x32xf32>
    %116 = vector.extract_strided_slice %114 {offsets = [0, 32], sizes = [2, 32], strides = [1, 1]} : vector<2x64xf32> to vector<2x32xf32>
    %117 = vector.extract_strided_slice %105 {offsets = [0, 64], sizes = [2, 32], strides = [1, 1]} : vector<2x96xf32> to vector<2x32xf32>
    %118 = vector.extract_strided_slice %106 {offsets = [0, 64], sizes = [2, 32], strides = [1, 1]} : vector<2x96xf32> to vector<2x32xf32>
    %119 = arith.addf %118, %14 : vector<2x32xf32>
    %120 = arith.mulf %115, %119 : vector<2x32xf32>
    %121 = arith.addf %117, %120 : vector<2x32xf32>
    %122 = math.tanh %121 : vector<2x32xf32>
    %cst_41 = arith.constant 1.000000e+00 : f32
    %123 = vector.broadcast %cst_41 : f32 to vector<2x32xf32>
    %124 = arith.subf %123, %116 : vector<2x32xf32>
    %125 = arith.mulf %124, %122 : vector<2x32xf32>
    %126 = arith.mulf %116, %70 : vector<2x32xf32>
    %127 = arith.addf %125, %126 : vector<2x32xf32>
    %128 = vector.shape_cast %127 : vector<2x32xf32> to vector<1x2x32xf32>
    %129 = arith.index_cast %102 : i32 to index
    %c0_42 = arith.constant 0 : index
    %c0_43 = arith.constant 0 : index
    %130 = vector.load %arg9[%129, %c0_42, %c0_43] : memref<8x2x32xf32, #tpu.memory_space<vmem>>, vector<1x2x32xf32>
    tpu.vector_store %arg9[%129, %c0_42, %c0_43], %128 {strides = array<i32>} : memref<8x2x32xf32, #tpu.memory_space<vmem>>, vector<1x2x32xf32>,
    %c2_i32 = arith.constant 2 : i32
    %131 = arith.index_cast %c2_i32 : i32 to index
    %c0_44 = arith.constant 0 : index
    %c0_45 = arith.constant 0 : index
    %132 = vector.load %arg1[%131, %c0_44, %c0_45] : memref<8x2x96xf32, #tpu.memory_space<vmem>>, vector<1x2x96xf32>
    %133 = vector.shape_cast %132 : vector<1x2x96xf32> to vector<2x96xf32>
    %cst_46 = arith.constant dense<0.000000e+00> : vector<2x96xf32>
    %134 = tpu.matmul %98, %4, %cst_46 {dimension_numbers = #tpu.dot_dimension_numbers<[1], [0], [0], [1], [0, 0, 1, 1], [], []>} : vector<2x32xf32>, vector<32x96xf32>, vector<2x96xf32> -> vector<2x96xf32>
    %135 = vector.extract_strided_slice %133 {offsets = [0, 0], sizes = [2, 64], strides = [1, 1]} : vector<2x96xf32> to vector<2x64xf32>
    %136 = vector.extract_strided_slice %134 {offsets = [0, 0], sizes = [2, 64], strides = [1, 1]} : vector<2x96xf32> to vector<2x64xf32>
    %137 = arith.addf %135, %136 : vector<2x64xf32>
    %138 = arith.negf %137 : vector<2x64xf32>
    %139 = math.exp %138 : vector<2x64xf32>
    %cst_47 = arith.constant 1.000000e+00 : f32
    %140 = vector.broadcast %cst_47 : f32 to vector<2x64xf32>
    %141 = arith.addf %140, %139 : vector<2x64xf32>
    %142 = arith.divf %140, %141 : vector<2x64xf32>
    %143 = vector.extract_strided_slice %142 {offsets = [0, 0], sizes = [2, 32], strides = [1, 1]} : vector<2x64xf32> to vector<2x32xf32>
    %144 = vector.extract_strided_slice %142 {offsets = [0, 32], sizes = [2, 32], strides = [1, 1]} : vector<2x64xf32> to vector<2x32xf32>
    %145 = vector.extract_strided_slice %133 {offsets = [0, 64], sizes = [2, 32], strides = [1, 1]} : vector<2x96xf32> to vector<2x32xf32>
    %146 = vector.extract_strided_slice %134 {offsets = [0, 64], sizes = [2, 32], strides = [1, 1]} : vector<2x96xf32> to vector<2x32xf32>
    %147 = arith.addf %146, %10 : vector<2x32xf32>
    %148 = arith.mulf %143, %147 : vector<2x32xf32>
    %149 = arith.addf %145, %148 : vector<2x32xf32>
    %150 = math.tanh %149 : vector<2x32xf32>
    %cst_48 = arith.constant 1.000000e+00 : f32
    %151 = vector.broadcast %cst_48 : f32 to vector<2x32xf32>
    %152 = arith.subf %151, %144 : vector<2x32xf32>
    %153 = arith.mulf %152, %150 : vector<2x32xf32>
    %154 = arith.mulf %144, %98 : vector<2x32xf32>
    %155 = arith.addf %153, %154 : vector<2x32xf32>
    %156 = vector.shape_cast %155 : vector<2x32xf32> to vector<1x2x32xf32>
    %157 = arith.index_cast %c2_i32 : i32 to index
    %c0_49 = arith.constant 0 : index
    %c0_50 = arith.constant 0 : index
    %158 = vector.load %arg8[%157, %c0_49, %c0_50] : memref<8x2x32xf32, #tpu.memory_space<vmem>>, vector<1x2x32xf32>
    tpu.vector_store %arg8[%157, %c0_49, %c0_50], %156 {strides = array<i32>} : memref<8x2x32xf32, #tpu.memory_space<vmem>>, vector<1x2x32xf32>,
    %c7_i32_51 = arith.constant 7 : i32
    %159 = arith.subi %c7_i32_51, %c2_i32 : i32
    %160 = arith.index_cast %159 : i32 to index
    %c0_52 = arith.constant 0 : index
    %c0_53 = arith.constant 0 : index
    %161 = vector.load %arg2[%160, %c0_52, %c0_53] : memref<8x2x96xf32, #tpu.memory_space<vmem>>, vector<1x2x96xf32>
    %162 = vector.shape_cast %161 : vector<1x2x96xf32> to vector<2x96xf32>
    %cst_54 = arith.constant dense<0.000000e+00> : vector<2x96xf32>
    %163 = tpu.matmul %127, %6, %cst_54 {dimension_numbers = #tpu.dot_dimension_numbers<[1], [0], [0], [1], [0, 0, 1, 1], [], []>} : vector<2x32xf32>, vector<32x96xf32>, vector<2x96xf32> -> vector<2x96xf32>
    %164 = vector.extract_strided_slice %162 {offsets = [0, 0], sizes = [2, 64], strides = [1, 1]} : vector<2x96xf32> to vector<2x64xf32>
    %165 = vector.extract_strided_slice %163 {offsets = [0, 0], sizes = [2, 64], strides = [1, 1]} : vector<2x96xf32> to vector<2x64xf32>
    %166 = arith.addf %164, %165 : vector<2x64xf32>
    %167 = arith.negf %166 : vector<2x64xf32>
    %168 = math.exp %167 : vector<2x64xf32>
    %cst_55 = arith.constant 1.000000e+00 : f32
    %169 = vector.broadcast %cst_55 : f32 to vector<2x64xf32>
    %170 = arith.addf %169, %168 : vector<2x64xf32>
    %171 = arith.divf %169, %170 : vector<2x64xf32>
    %172 = vector.extract_strided_slice %171 {offsets = [0, 0], sizes = [2, 32], strides = [1, 1]} : vector<2x64xf32> to vector<2x32xf32>
    %173 = vector.extract_strided_slice %171 {offsets = [0, 32], sizes = [2, 32], strides = [1, 1]} : vector<2x64xf32> to vector<2x32xf32>
    %174 = vector.extract_strided_slice %162 {offsets = [0, 64], sizes = [2, 32], strides = [1, 1]} : vector<2x96xf32> to vector<2x32xf32>
    %175 = vector.extract_strided_slice %163 {offsets = [0, 64], sizes = [2, 32], strides = [1, 1]} : vector<2x96xf32> to vector<2x32xf32>
    %176 = arith.addf %175, %14 : vector<2x32xf32>
    %177 = arith.mulf %172, %176 : vector<2x32xf32>
    %178 = arith.addf %174, %177 : vector<2x32xf32>
    %179 = math.tanh %178 : vector<2x32xf32>
    %cst_56 = arith.constant 1.000000e+00 : f32
    %180 = vector.broadcast %cst_56 : f32 to vector<2x32xf32>
    %181 = arith.subf %180, %173 : vector<2x32xf32>
    %182 = arith.mulf %181, %179 : vector<2x32xf32>
    %183 = arith.mulf %173, %127 : vector<2x32xf32>
    %184 = arith.addf %182, %183 : vector<2x32xf32>
    %185 = vector.shape_cast %184 : vector<2x32xf32> to vector<1x2x32xf32>
    %186 = arith.index_cast %159 : i32 to index
    %c0_57 = arith.constant 0 : index
    %c0_58 = arith.constant 0 : index
    %187 = vector.load %arg9[%186, %c0_57, %c0_58] : memref<8x2x32xf32, #tpu.memory_space<vmem>>, vector<1x2x32xf32>
    tpu.vector_store %arg9[%186, %c0_57, %c0_58], %185 {strides = array<i32>} : memref<8x2x32xf32, #tpu.memory_space<vmem>>, vector<1x2x32xf32>,
    %c3_i32 = arith.constant 3 : i32
    %188 = arith.index_cast %c3_i32 : i32 to index
    %c0_59 = arith.constant 0 : index
    %c0_60 = arith.constant 0 : index
    %189 = vector.load %arg1[%188, %c0_59, %c0_60] : memref<8x2x96xf32, #tpu.memory_space<vmem>>, vector<1x2x96xf32>
    %190 = vector.shape_cast %189 : vector<1x2x96xf32> to vector<2x96xf32>
    %cst_61 = arith.constant dense<0.000000e+00> : vector<2x96xf32>
    %191 = tpu.matmul %155, %4, %cst_61 {dimension_numbers = #tpu.dot_dimension_numbers<[1], [0], [0], [1], [0, 0, 1, 1], [], []>} : vector<2x32xf32>, vector<32x96xf32>, vector<2x96xf32> -> vector<2x96xf32>
    %192 = vector.extract_strided_slice %190 {offsets = [0, 0], sizes = [2, 64], strides = [1, 1]} : vector<2x96xf32> to vector<2x64xf32>
    %193 = vector.extract_strided_slice %191 {offsets = [0, 0], sizes = [2, 64], strides = [1, 1]} : vector<2x96xf32> to vector<2x64xf32>
    %194 = arith.addf %192, %193 : vector<2x64xf32>
    %195 = arith.negf %194 : vector<2x64xf32>
    %196 = math.exp %195 : vector<2x64xf32>
    %cst_62 = arith.constant 1.000000e+00 : f32
    %197 = vector.broadcast %cst_62 : f32 to vector<2x64xf32>
    %198 = arith.addf %197, %196 : vector<2x64xf32>
    %199 = arith.divf %197, %198 : vector<2x64xf32>
    %200 = vector.extract_strided_slice %199 {offsets = [0, 0], sizes = [2, 32], strides = [1, 1]} : vector<2x64xf32> to vector<2x32xf32>
    %201 = vector.extract_strided_slice %199 {offsets = [0, 32], sizes = [2, 32], strides = [1, 1]} : vector<2x64xf32> to vector<2x32xf32>
    %202 = vector.extract_strided_slice %190 {offsets = [0, 64], sizes = [2, 32], strides = [1, 1]} : vector<2x96xf32> to vector<2x32xf32>
    %203 = vector.extract_strided_slice %191 {offsets = [0, 64], sizes = [2, 32], strides = [1, 1]} : vector<2x96xf32> to vector<2x32xf32>
    %204 = arith.addf %203, %10 : vector<2x32xf32>
    %205 = arith.mulf %200, %204 : vector<2x32xf32>
    %206 = arith.addf %202, %205 : vector<2x32xf32>
    %207 = math.tanh %206 : vector<2x32xf32>
    %cst_63 = arith.constant 1.000000e+00 : f32
    %208 = vector.broadcast %cst_63 : f32 to vector<2x32xf32>
    %209 = arith.subf %208, %201 : vector<2x32xf32>
    %210 = arith.mulf %209, %207 : vector<2x32xf32>
    %211 = arith.mulf %201, %155 : vector<2x32xf32>
    %212 = arith.addf %210, %211 : vector<2x32xf32>
    %213 = vector.shape_cast %212 : vector<2x32xf32> to vector<1x2x32xf32>
    %214 = arith.index_cast %c3_i32 : i32 to index
    %c0_64 = arith.constant 0 : index
    %c0_65 = arith.constant 0 : index
    %215 = vector.load %arg8[%214, %c0_64, %c0_65] : memref<8x2x32xf32, #tpu.memory_space<vmem>>, vector<1x2x32xf32>
    tpu.vector_store %arg8[%214, %c0_64, %c0_65], %213 {strides = array<i32>} : memref<8x2x32xf32, #tpu.memory_space<vmem>>, vector<1x2x32xf32>,
    %c7_i32_66 = arith.constant 7 : i32
    %216 = arith.subi %c7_i32_66, %c3_i32 : i32
    %217 = arith.index_cast %216 : i32 to index
    %c0_67 = arith.constant 0 : index
    %c0_68 = arith.constant 0 : index
    %218 = vector.load %arg2[%217, %c0_67, %c0_68] : memref<8x2x96xf32, #tpu.memory_space<vmem>>, vector<1x2x96xf32>
    %219 = vector.shape_cast %218 : vector<1x2x96xf32> to vector<2x96xf32>
    %cst_69 = arith.constant dense<0.000000e+00> : vector<2x96xf32>
    %220 = tpu.matmul %184, %6, %cst_69 {dimension_numbers = #tpu.dot_dimension_numbers<[1], [0], [0], [1], [0, 0, 1, 1], [], []>} : vector<2x32xf32>, vector<32x96xf32>, vector<2x96xf32> -> vector<2x96xf32>
    %221 = vector.extract_strided_slice %219 {offsets = [0, 0], sizes = [2, 64], strides = [1, 1]} : vector<2x96xf32> to vector<2x64xf32>
    %222 = vector.extract_strided_slice %220 {offsets = [0, 0], sizes = [2, 64], strides = [1, 1]} : vector<2x96xf32> to vector<2x64xf32>
    %223 = arith.addf %221, %222 : vector<2x64xf32>
    %224 = arith.negf %223 : vector<2x64xf32>
    %225 = math.exp %224 : vector<2x64xf32>
    %cst_70 = arith.constant 1.000000e+00 : f32
    %226 = vector.broadcast %cst_70 : f32 to vector<2x64xf32>
    %227 = arith.addf %226, %225 : vector<2x64xf32>
    %228 = arith.divf %226, %227 : vector<2x64xf32>
    %229 = vector.extract_strided_slice %228 {offsets = [0, 0], sizes = [2, 32], strides = [1, 1]} : vector<2x64xf32> to vector<2x32xf32>
    %230 = vector.extract_strided_slice %228 {offsets = [0, 32], sizes = [2, 32], strides = [1, 1]} : vector<2x64xf32> to vector<2x32xf32>
    %231 = vector.extract_strided_slice %219 {offsets = [0, 64], sizes = [2, 32], strides = [1, 1]} : vector<2x96xf32> to vector<2x32xf32>
    %232 = vector.extract_strided_slice %220 {offsets = [0, 64], sizes = [2, 32], strides = [1, 1]} : vector<2x96xf32> to vector<2x32xf32>
    %233 = arith.addf %232, %14 : vector<2x32xf32>
    %234 = arith.mulf %229, %233 : vector<2x32xf32>
    %235 = arith.addf %231, %234 : vector<2x32xf32>
    %236 = math.tanh %235 : vector<2x32xf32>
    %cst_71 = arith.constant 1.000000e+00 : f32
    %237 = vector.broadcast %cst_71 : f32 to vector<2x32xf32>
    %238 = arith.subf %237, %230 : vector<2x32xf32>
    %239 = arith.mulf %238, %236 : vector<2x32xf32>
    %240 = arith.mulf %230, %184 : vector<2x32xf32>
    %241 = arith.addf %239, %240 : vector<2x32xf32>
    %242 = vector.shape_cast %241 : vector<2x32xf32> to vector<1x2x32xf32>
    %243 = arith.index_cast %216 : i32 to index
    %c0_72 = arith.constant 0 : index
    %c0_73 = arith.constant 0 : index
    %244 = vector.load %arg9[%243, %c0_72, %c0_73] : memref<8x2x32xf32, #tpu.memory_space<vmem>>, vector<1x2x32xf32>
    tpu.vector_store %arg9[%243, %c0_72, %c0_73], %242 {strides = array<i32>} : memref<8x2x32xf32, #tpu.memory_space<vmem>>, vector<1x2x32xf32>,
    %c4_i32 = arith.constant 4 : i32
    %245 = arith.index_cast %c4_i32 : i32 to index
    %c0_74 = arith.constant 0 : index
    %c0_75 = arith.constant 0 : index
    %246 = vector.load %arg1[%245, %c0_74, %c0_75] : memref<8x2x96xf32, #tpu.memory_space<vmem>>, vector<1x2x96xf32>
    %247 = vector.shape_cast %246 : vector<1x2x96xf32> to vector<2x96xf32>
    %cst_76 = arith.constant dense<0.000000e+00> : vector<2x96xf32>
    %248 = tpu.matmul %212, %4, %cst_76 {dimension_numbers = #tpu.dot_dimension_numbers<[1], [0], [0], [1], [0, 0, 1, 1], [], []>} : vector<2x32xf32>, vector<32x96xf32>, vector<2x96xf32> -> vector<2x96xf32>
    %249 = vector.extract_strided_slice %247 {offsets = [0, 0], sizes = [2, 64], strides = [1, 1]} : vector<2x96xf32> to vector<2x64xf32>
    %250 = vector.extract_strided_slice %248 {offsets = [0, 0], sizes = [2, 64], strides = [1, 1]} : vector<2x96xf32> to vector<2x64xf32>
    %251 = arith.addf %249, %250 : vector<2x64xf32>
    %252 = arith.negf %251 : vector<2x64xf32>
    %253 = math.exp %252 : vector<2x64xf32>
    %cst_77 = arith.constant 1.000000e+00 : f32
    %254 = vector.broadcast %cst_77 : f32 to vector<2x64xf32>
    %255 = arith.addf %254, %253 : vector<2x64xf32>
    %256 = arith.divf %254, %255 : vector<2x64xf32>
    %257 = vector.extract_strided_slice %256 {offsets = [0, 0], sizes = [2, 32], strides = [1, 1]} : vector<2x64xf32> to vector<2x32xf32>
    %258 = vector.extract_strided_slice %256 {offsets = [0, 32], sizes = [2, 32], strides = [1, 1]} : vector<2x64xf32> to vector<2x32xf32>
    %259 = vector.extract_strided_slice %247 {offsets = [0, 64], sizes = [2, 32], strides = [1, 1]} : vector<2x96xf32> to vector<2x32xf32>
    %260 = vector.extract_strided_slice %248 {offsets = [0, 64], sizes = [2, 32], strides = [1, 1]} : vector<2x96xf32> to vector<2x32xf32>
    %261 = arith.addf %260, %10 : vector<2x32xf32>
    %262 = arith.mulf %257, %261 : vector<2x32xf32>
    %263 = arith.addf %259, %262 : vector<2x32xf32>
    %264 = math.tanh %263 : vector<2x32xf32>
    %cst_78 = arith.constant 1.000000e+00 : f32
    %265 = vector.broadcast %cst_78 : f32 to vector<2x32xf32>
    %266 = arith.subf %265, %258 : vector<2x32xf32>
    %267 = arith.mulf %266, %264 : vector<2x32xf32>
    %268 = arith.mulf %258, %212 : vector<2x32xf32>
    %269 = arith.addf %267, %268 : vector<2x32xf32>
    %270 = vector.shape_cast %269 : vector<2x32xf32> to vector<1x2x32xf32>
    %271 = arith.index_cast %c4_i32 : i32 to index
    %c0_79 = arith.constant 0 : index
    %c0_80 = arith.constant 0 : index
    %272 = vector.load %arg8[%271, %c0_79, %c0_80] : memref<8x2x32xf32, #tpu.memory_space<vmem>>, vector<1x2x32xf32>
    tpu.vector_store %arg8[%271, %c0_79, %c0_80], %270 {strides = array<i32>} : memref<8x2x32xf32, #tpu.memory_space<vmem>>, vector<1x2x32xf32>,
    %c7_i32_81 = arith.constant 7 : i32
    %273 = arith.subi %c7_i32_81, %c4_i32 : i32
    %274 = arith.index_cast %273 : i32 to index
    %c0_82 = arith.constant 0 : index
    %c0_83 = arith.constant 0 : index
    %275 = vector.load %arg2[%274, %c0_82, %c0_83] : memref<8x2x96xf32, #tpu.memory_space<vmem>>, vector<1x2x96xf32>
    %276 = vector.shape_cast %275 : vector<1x2x96xf32> to vector<2x96xf32>
    %cst_84 = arith.constant dense<0.000000e+00> : vector<2x96xf32>
    %277 = tpu.matmul %241, %6, %cst_84 {dimension_numbers = #tpu.dot_dimension_numbers<[1], [0], [0], [1], [0, 0, 1, 1], [], []>} : vector<2x32xf32>, vector<32x96xf32>, vector<2x96xf32> -> vector<2x96xf32>
    %278 = vector.extract_strided_slice %276 {offsets = [0, 0], sizes = [2, 64], strides = [1, 1]} : vector<2x96xf32> to vector<2x64xf32>
    %279 = vector.extract_strided_slice %277 {offsets = [0, 0], sizes = [2, 64], strides = [1, 1]} : vector<2x96xf32> to vector<2x64xf32>
    %280 = arith.addf %278, %279 : vector<2x64xf32>
    %281 = arith.negf %280 : vector<2x64xf32>
    %282 = math.exp %281 : vector<2x64xf32>
    %cst_85 = arith.constant 1.000000e+00 : f32
    %283 = vector.broadcast %cst_85 : f32 to vector<2x64xf32>
    %284 = arith.addf %283, %282 : vector<2x64xf32>
    %285 = arith.divf %283, %284 : vector<2x64xf32>
    %286 = vector.extract_strided_slice %285 {offsets = [0, 0], sizes = [2, 32], strides = [1, 1]} : vector<2x64xf32> to vector<2x32xf32>
    %287 = vector.extract_strided_slice %285 {offsets = [0, 32], sizes = [2, 32], strides = [1, 1]} : vector<2x64xf32> to vector<2x32xf32>
    %288 = vector.extract_strided_slice %276 {offsets = [0, 64], sizes = [2, 32], strides = [1, 1]} : vector<2x96xf32> to vector<2x32xf32>
    %289 = vector.extract_strided_slice %277 {offsets = [0, 64], sizes = [2, 32], strides = [1, 1]} : vector<2x96xf32> to vector<2x32xf32>
    %290 = arith.addf %289, %14 : vector<2x32xf32>
    %291 = arith.mulf %286, %290 : vector<2x32xf32>
    %292 = arith.addf %288, %291 : vector<2x32xf32>
    %293 = math.tanh %292 : vector<2x32xf32>
    %cst_86 = arith.constant 1.000000e+00 : f32
    %294 = vector.broadcast %cst_86 : f32 to vector<2x32xf32>
    %295 = arith.subf %294, %287 : vector<2x32xf32>
    %296 = arith.mulf %295, %293 : vector<2x32xf32>
    %297 = arith.mulf %287, %241 : vector<2x32xf32>
    %298 = arith.addf %296, %297 : vector<2x32xf32>
    %299 = vector.shape_cast %298 : vector<2x32xf32> to vector<1x2x32xf32>
    %300 = arith.index_cast %273 : i32 to index
    %c0_87 = arith.constant 0 : index
    %c0_88 = arith.constant 0 : index
    %301 = vector.load %arg9[%300, %c0_87, %c0_88] : memref<8x2x32xf32, #tpu.memory_space<vmem>>, vector<1x2x32xf32>
    tpu.vector_store %arg9[%300, %c0_87, %c0_88], %299 {strides = array<i32>} : memref<8x2x32xf32, #tpu.memory_space<vmem>>, vector<1x2x32xf32>,
    %c5_i32 = arith.constant 5 : i32
    %302 = arith.index_cast %c5_i32 : i32 to index
    %c0_89 = arith.constant 0 : index
    %c0_90 = arith.constant 0 : index
    %303 = vector.load %arg1[%302, %c0_89, %c0_90] : memref<8x2x96xf32, #tpu.memory_space<vmem>>, vector<1x2x96xf32>
    %304 = vector.shape_cast %303 : vector<1x2x96xf32> to vector<2x96xf32>
    %cst_91 = arith.constant dense<0.000000e+00> : vector<2x96xf32>
    %305 = tpu.matmul %269, %4, %cst_91 {dimension_numbers = #tpu.dot_dimension_numbers<[1], [0], [0], [1], [0, 0, 1, 1], [], []>} : vector<2x32xf32>, vector<32x96xf32>, vector<2x96xf32> -> vector<2x96xf32>
    %306 = vector.extract_strided_slice %304 {offsets = [0, 0], sizes = [2, 64], strides = [1, 1]} : vector<2x96xf32> to vector<2x64xf32>
    %307 = vector.extract_strided_slice %305 {offsets = [0, 0], sizes = [2, 64], strides = [1, 1]} : vector<2x96xf32> to vector<2x64xf32>
    %308 = arith.addf %306, %307 : vector<2x64xf32>
    %309 = arith.negf %308 : vector<2x64xf32>
    %310 = math.exp %309 : vector<2x64xf32>
    %cst_92 = arith.constant 1.000000e+00 : f32
    %311 = vector.broadcast %cst_92 : f32 to vector<2x64xf32>
    %312 = arith.addf %311, %310 : vector<2x64xf32>
    %313 = arith.divf %311, %312 : vector<2x64xf32>
    %314 = vector.extract_strided_slice %313 {offsets = [0, 0], sizes = [2, 32], strides = [1, 1]} : vector<2x64xf32> to vector<2x32xf32>
    %315 = vector.extract_strided_slice %313 {offsets = [0, 32], sizes = [2, 32], strides = [1, 1]} : vector<2x64xf32> to vector<2x32xf32>
    %316 = vector.extract_strided_slice %304 {offsets = [0, 64], sizes = [2, 32], strides = [1, 1]} : vector<2x96xf32> to vector<2x32xf32>
    %317 = vector.extract_strided_slice %305 {offsets = [0, 64], sizes = [2, 32], strides = [1, 1]} : vector<2x96xf32> to vector<2x32xf32>
    %318 = arith.addf %317, %10 : vector<2x32xf32>
    %319 = arith.mulf %314, %318 : vector<2x32xf32>
    %320 = arith.addf %316, %319 : vector<2x32xf32>
    %321 = math.tanh %320 : vector<2x32xf32>
    %cst_93 = arith.constant 1.000000e+00 : f32
    %322 = vector.broadcast %cst_93 : f32 to vector<2x32xf32>
    %323 = arith.subf %322, %315 : vector<2x32xf32>
    %324 = arith.mulf %323, %321 : vector<2x32xf32>
    %325 = arith.mulf %315, %269 : vector<2x32xf32>
    %326 = arith.addf %324, %325 : vector<2x32xf32>
    %327 = vector.shape_cast %326 : vector<2x32xf32> to vector<1x2x32xf32>
    %328 = arith.index_cast %c5_i32 : i32 to index
    %c0_94 = arith.constant 0 : index
    %c0_95 = arith.constant 0 : index
    %329 = vector.load %arg8[%328, %c0_94, %c0_95] : memref<8x2x32xf32, #tpu.memory_space<vmem>>, vector<1x2x32xf32>
    tpu.vector_store %arg8[%328, %c0_94, %c0_95], %327 {strides = array<i32>} : memref<8x2x32xf32, #tpu.memory_space<vmem>>, vector<1x2x32xf32>,
    %c7_i32_96 = arith.constant 7 : i32
    %330 = arith.subi %c7_i32_96, %c5_i32 : i32
    %331 = arith.index_cast %330 : i32 to index
    %c0_97 = arith.constant 0 : index
    %c0_98 = arith.constant 0 : index
    %332 = vector.load %arg2[%331, %c0_97, %c0_98] : memref<8x2x96xf32, #tpu.memory_space<vmem>>, vector<1x2x96xf32>
    %333 = vector.shape_cast %332 : vector<1x2x96xf32> to vector<2x96xf32>
    %cst_99 = arith.constant dense<0.000000e+00> : vector<2x96xf32>
    %334 = tpu.matmul %298, %6, %cst_99 {dimension_numbers = #tpu.dot_dimension_numbers<[1], [0], [0], [1], [0, 0, 1, 1], [], []>} : vector<2x32xf32>, vector<32x96xf32>, vector<2x96xf32> -> vector<2x96xf32>
    %335 = vector.extract_strided_slice %333 {offsets = [0, 0], sizes = [2, 64], strides = [1, 1]} : vector<2x96xf32> to vector<2x64xf32>
    %336 = vector.extract_strided_slice %334 {offsets = [0, 0], sizes = [2, 64], strides = [1, 1]} : vector<2x96xf32> to vector<2x64xf32>
    %337 = arith.addf %335, %336 : vector<2x64xf32>
    %338 = arith.negf %337 : vector<2x64xf32>
    %339 = math.exp %338 : vector<2x64xf32>
    %cst_100 = arith.constant 1.000000e+00 : f32
    %340 = vector.broadcast %cst_100 : f32 to vector<2x64xf32>
    %341 = arith.addf %340, %339 : vector<2x64xf32>
    %342 = arith.divf %340, %341 : vector<2x64xf32>
    %343 = vector.extract_strided_slice %342 {offsets = [0, 0], sizes = [2, 32], strides = [1, 1]} : vector<2x64xf32> to vector<2x32xf32>
    %344 = vector.extract_strided_slice %342 {offsets = [0, 32], sizes = [2, 32], strides = [1, 1]} : vector<2x64xf32> to vector<2x32xf32>
    %345 = vector.extract_strided_slice %333 {offsets = [0, 64], sizes = [2, 32], strides = [1, 1]} : vector<2x96xf32> to vector<2x32xf32>
    %346 = vector.extract_strided_slice %334 {offsets = [0, 64], sizes = [2, 32], strides = [1, 1]} : vector<2x96xf32> to vector<2x32xf32>
    %347 = arith.addf %346, %14 : vector<2x32xf32>
    %348 = arith.mulf %343, %347 : vector<2x32xf32>
    %349 = arith.addf %345, %348 : vector<2x32xf32>
    %350 = math.tanh %349 : vector<2x32xf32>
    %cst_101 = arith.constant 1.000000e+00 : f32
    %351 = vector.broadcast %cst_101 : f32 to vector<2x32xf32>
    %352 = arith.subf %351, %344 : vector<2x32xf32>
    %353 = arith.mulf %352, %350 : vector<2x32xf32>
    %354 = arith.mulf %344, %298 : vector<2x32xf32>
    %355 = arith.addf %353, %354 : vector<2x32xf32>
    %356 = vector.shape_cast %355 : vector<2x32xf32> to vector<1x2x32xf32>
    %357 = arith.index_cast %330 : i32 to index
    %c0_102 = arith.constant 0 : index
    %c0_103 = arith.constant 0 : index
    %358 = vector.load %arg9[%357, %c0_102, %c0_103] : memref<8x2x32xf32, #tpu.memory_space<vmem>>, vector<1x2x32xf32>
    tpu.vector_store %arg9[%357, %c0_102, %c0_103], %356 {strides = array<i32>} : memref<8x2x32xf32, #tpu.memory_space<vmem>>, vector<1x2x32xf32>,
    %c6_i32 = arith.constant 6 : i32
    %359 = arith.index_cast %c6_i32 : i32 to index
    %c0_104 = arith.constant 0 : index
    %c0_105 = arith.constant 0 : index
    %360 = vector.load %arg1[%359, %c0_104, %c0_105] : memref<8x2x96xf32, #tpu.memory_space<vmem>>, vector<1x2x96xf32>
    %361 = vector.shape_cast %360 : vector<1x2x96xf32> to vector<2x96xf32>
    %cst_106 = arith.constant dense<0.000000e+00> : vector<2x96xf32>
    %362 = tpu.matmul %326, %4, %cst_106 {dimension_numbers = #tpu.dot_dimension_numbers<[1], [0], [0], [1], [0, 0, 1, 1], [], []>} : vector<2x32xf32>, vector<32x96xf32>, vector<2x96xf32> -> vector<2x96xf32>
    %363 = vector.extract_strided_slice %361 {offsets = [0, 0], sizes = [2, 64], strides = [1, 1]} : vector<2x96xf32> to vector<2x64xf32>
    %364 = vector.extract_strided_slice %362 {offsets = [0, 0], sizes = [2, 64], strides = [1, 1]} : vector<2x96xf32> to vector<2x64xf32>
    %365 = arith.addf %363, %364 : vector<2x64xf32>
    %366 = arith.negf %365 : vector<2x64xf32>
    %367 = math.exp %366 : vector<2x64xf32>
    %cst_107 = arith.constant 1.000000e+00 : f32
    %368 = vector.broadcast %cst_107 : f32 to vector<2x64xf32>
    %369 = arith.addf %368, %367 : vector<2x64xf32>
    %370 = arith.divf %368, %369 : vector<2x64xf32>
    %371 = vector.extract_strided_slice %370 {offsets = [0, 0], sizes = [2, 32], strides = [1, 1]} : vector<2x64xf32> to vector<2x32xf32>
    %372 = vector.extract_strided_slice %370 {offsets = [0, 32], sizes = [2, 32], strides = [1, 1]} : vector<2x64xf32> to vector<2x32xf32>
    %373 = vector.extract_strided_slice %361 {offsets = [0, 64], sizes = [2, 32], strides = [1, 1]} : vector<2x96xf32> to vector<2x32xf32>
    %374 = vector.extract_strided_slice %362 {offsets = [0, 64], sizes = [2, 32], strides = [1, 1]} : vector<2x96xf32> to vector<2x32xf32>
    %375 = arith.addf %374, %10 : vector<2x32xf32>
    %376 = arith.mulf %371, %375 : vector<2x32xf32>
    %377 = arith.addf %373, %376 : vector<2x32xf32>
    %378 = math.tanh %377 : vector<2x32xf32>
    %cst_108 = arith.constant 1.000000e+00 : f32
    %379 = vector.broadcast %cst_108 : f32 to vector<2x32xf32>
    %380 = arith.subf %379, %372 : vector<2x32xf32>
    %381 = arith.mulf %380, %378 : vector<2x32xf32>
    %382 = arith.mulf %372, %326 : vector<2x32xf32>
    %383 = arith.addf %381, %382 : vector<2x32xf32>
    %384 = vector.shape_cast %383 : vector<2x32xf32> to vector<1x2x32xf32>
    %385 = arith.index_cast %c6_i32 : i32 to index
    %c0_109 = arith.constant 0 : index
    %c0_110 = arith.constant 0 : index
    %386 = vector.load %arg8[%385, %c0_109, %c0_110] : memref<8x2x32xf32, #tpu.memory_space<vmem>>, vector<1x2x32xf32>
    tpu.vector_store %arg8[%385, %c0_109, %c0_110], %384 {strides = array<i32>} : memref<8x2x32xf32, #tpu.memory_space<vmem>>, vector<1x2x32xf32>,
    %c7_i32_111 = arith.constant 7 : i32
    %387 = arith.subi %c7_i32_111, %c6_i32 : i32
    %388 = arith.index_cast %387 : i32 to index
    %c0_112 = arith.constant 0 : index
    %c0_113 = arith.constant 0 : index
    %389 = vector.load %arg2[%388, %c0_112, %c0_113] : memref<8x2x96xf32, #tpu.memory_space<vmem>>, vector<1x2x96xf32>
    %390 = vector.shape_cast %389 : vector<1x2x96xf32> to vector<2x96xf32>
    %cst_114 = arith.constant dense<0.000000e+00> : vector<2x96xf32>
    %391 = tpu.matmul %355, %6, %cst_114 {dimension_numbers = #tpu.dot_dimension_numbers<[1], [0], [0], [1], [0, 0, 1, 1], [], []>} : vector<2x32xf32>, vector<32x96xf32>, vector<2x96xf32> -> vector<2x96xf32>
    %392 = vector.extract_strided_slice %390 {offsets = [0, 0], sizes = [2, 64], strides = [1, 1]} : vector<2x96xf32> to vector<2x64xf32>
    %393 = vector.extract_strided_slice %391 {offsets = [0, 0], sizes = [2, 64], strides = [1, 1]} : vector<2x96xf32> to vector<2x64xf32>
    %394 = arith.addf %392, %393 : vector<2x64xf32>
    %395 = arith.negf %394 : vector<2x64xf32>
    %396 = math.exp %395 : vector<2x64xf32>
    %cst_115 = arith.constant 1.000000e+00 : f32
    %397 = vector.broadcast %cst_115 : f32 to vector<2x64xf32>
    %398 = arith.addf %397, %396 : vector<2x64xf32>
    %399 = arith.divf %397, %398 : vector<2x64xf32>
    %400 = vector.extract_strided_slice %399 {offsets = [0, 0], sizes = [2, 32], strides = [1, 1]} : vector<2x64xf32> to vector<2x32xf32>
    %401 = vector.extract_strided_slice %399 {offsets = [0, 32], sizes = [2, 32], strides = [1, 1]} : vector<2x64xf32> to vector<2x32xf32>
    %402 = vector.extract_strided_slice %390 {offsets = [0, 64], sizes = [2, 32], strides = [1, 1]} : vector<2x96xf32> to vector<2x32xf32>
    %403 = vector.extract_strided_slice %391 {offsets = [0, 64], sizes = [2, 32], strides = [1, 1]} : vector<2x96xf32> to vector<2x32xf32>
    %404 = arith.addf %403, %14 : vector<2x32xf32>
    %405 = arith.mulf %400, %404 : vector<2x32xf32>
    %406 = arith.addf %402, %405 : vector<2x32xf32>
    %407 = math.tanh %406 : vector<2x32xf32>
    %cst_116 = arith.constant 1.000000e+00 : f32
    %408 = vector.broadcast %cst_116 : f32 to vector<2x32xf32>
    %409 = arith.subf %408, %401 : vector<2x32xf32>
    %410 = arith.mulf %409, %407 : vector<2x32xf32>
    %411 = arith.mulf %401, %355 : vector<2x32xf32>
    %412 = arith.addf %410, %411 : vector<2x32xf32>
    %413 = vector.shape_cast %412 : vector<2x32xf32> to vector<1x2x32xf32>
    %414 = arith.index_cast %387 : i32 to index
    %c0_117 = arith.constant 0 : index
    %c0_118 = arith.constant 0 : index
    %415 = vector.load %arg9[%414, %c0_117, %c0_118] : memref<8x2x32xf32, #tpu.memory_space<vmem>>, vector<1x2x32xf32>
    tpu.vector_store %arg9[%414, %c0_117, %c0_118], %413 {strides = array<i32>} : memref<8x2x32xf32, #tpu.memory_space<vmem>>, vector<1x2x32xf32>,
    %c7_i32_119 = arith.constant 7 : i32
    %416 = arith.index_cast %c7_i32_119 : i32 to index
    %c0_120 = arith.constant 0 : index
    %c0_121 = arith.constant 0 : index
    %417 = vector.load %arg1[%416, %c0_120, %c0_121] : memref<8x2x96xf32, #tpu.memory_space<vmem>>, vector<1x2x96xf32>
    %418 = vector.shape_cast %417 : vector<1x2x96xf32> to vector<2x96xf32>
    %cst_122 = arith.constant dense<0.000000e+00> : vector<2x96xf32>
    %419 = tpu.matmul %383, %4, %cst_122 {dimension_numbers = #tpu.dot_dimension_numbers<[1], [0], [0], [1], [0, 0, 1, 1], [], []>} : vector<2x32xf32>, vector<32x96xf32>, vector<2x96xf32> -> vector<2x96xf32>
    %420 = vector.extract_strided_slice %418 {offsets = [0, 0], sizes = [2, 64], strides = [1, 1]} : vector<2x96xf32> to vector<2x64xf32>
    %421 = vector.extract_strided_slice %419 {offsets = [0, 0], sizes = [2, 64], strides = [1, 1]} : vector<2x96xf32> to vector<2x64xf32>
    %422 = arith.addf %420, %421 : vector<2x64xf32>
    %423 = arith.negf %422 : vector<2x64xf32>
    %424 = math.exp %423 : vector<2x64xf32>
    %cst_123 = arith.constant 1.000000e+00 : f32
    %425 = vector.broadcast %cst_123 : f32 to vector<2x64xf32>
    %426 = arith.addf %425, %424 : vector<2x64xf32>
    %427 = arith.divf %425, %426 : vector<2x64xf32>
    %428 = vector.extract_strided_slice %427 {offsets = [0, 0], sizes = [2, 32], strides = [1, 1]} : vector<2x64xf32> to vector<2x32xf32>
    %429 = vector.extract_strided_slice %427 {offsets = [0, 32], sizes = [2, 32], strides = [1, 1]} : vector<2x64xf32> to vector<2x32xf32>
    %430 = vector.extract_strided_slice %418 {offsets = [0, 64], sizes = [2, 32], strides = [1, 1]} : vector<2x96xf32> to vector<2x32xf32>
    %431 = vector.extract_strided_slice %419 {offsets = [0, 64], sizes = [2, 32], strides = [1, 1]} : vector<2x96xf32> to vector<2x32xf32>
    %432 = arith.addf %431, %10 : vector<2x32xf32>
    %433 = arith.mulf %428, %432 : vector<2x32xf32>
    %434 = arith.addf %430, %433 : vector<2x32xf32>
    %435 = math.tanh %434 : vector<2x32xf32>
    %cst_124 = arith.constant 1.000000e+00 : f32
    %436 = vector.broadcast %cst_124 : f32 to vector<2x32xf32>
    %437 = arith.subf %436, %429 : vector<2x32xf32>
    %438 = arith.mulf %437, %435 : vector<2x32xf32>
    %439 = arith.mulf %429, %383 : vector<2x32xf32>
    %440 = arith.addf %438, %439 : vector<2x32xf32>
    %441 = vector.shape_cast %440 : vector<2x32xf32> to vector<1x2x32xf32>
    %442 = arith.index_cast %c7_i32_119 : i32 to index
    %c0_125 = arith.constant 0 : index
    %c0_126 = arith.constant 0 : index
    %443 = vector.load %arg8[%442, %c0_125, %c0_126] : memref<8x2x32xf32, #tpu.memory_space<vmem>>, vector<1x2x32xf32>
    tpu.vector_store %arg8[%442, %c0_125, %c0_126], %441 {strides = array<i32>} : memref<8x2x32xf32, #tpu.memory_space<vmem>>, vector<1x2x32xf32>,
    %c7_i32_127 = arith.constant 7 : i32
    %444 = arith.subi %c7_i32_127, %c7_i32_119 : i32
    %445 = arith.index_cast %444 : i32 to index
    %c0_128 = arith.constant 0 : index
    %c0_129 = arith.constant 0 : index
    %446 = vector.load %arg2[%445, %c0_128, %c0_129] : memref<8x2x96xf32, #tpu.memory_space<vmem>>, vector<1x2x96xf32>
    %447 = vector.shape_cast %446 : vector<1x2x96xf32> to vector<2x96xf32>
    %cst_130 = arith.constant dense<0.000000e+00> : vector<2x96xf32>
    %448 = tpu.matmul %412, %6, %cst_130 {dimension_numbers = #tpu.dot_dimension_numbers<[1], [0], [0], [1], [0, 0, 1, 1], [], []>} : vector<2x32xf32>, vector<32x96xf32>, vector<2x96xf32> -> vector<2x96xf32>
    %449 = vector.extract_strided_slice %447 {offsets = [0, 0], sizes = [2, 64], strides = [1, 1]} : vector<2x96xf32> to vector<2x64xf32>
    %450 = vector.extract_strided_slice %448 {offsets = [0, 0], sizes = [2, 64], strides = [1, 1]} : vector<2x96xf32> to vector<2x64xf32>
    %451 = arith.addf %449, %450 : vector<2x64xf32>
    %452 = arith.negf %451 : vector<2x64xf32>
    %453 = math.exp %452 : vector<2x64xf32>
    %cst_131 = arith.constant 1.000000e+00 : f32
    %454 = vector.broadcast %cst_131 : f32 to vector<2x64xf32>
    %455 = arith.addf %454, %453 : vector<2x64xf32>
    %456 = arith.divf %454, %455 : vector<2x64xf32>
    %457 = vector.extract_strided_slice %456 {offsets = [0, 0], sizes = [2, 32], strides = [1, 1]} : vector<2x64xf32> to vector<2x32xf32>
    %458 = vector.extract_strided_slice %456 {offsets = [0, 32], sizes = [2, 32], strides = [1, 1]} : vector<2x64xf32> to vector<2x32xf32>
    %459 = vector.extract_strided_slice %447 {offsets = [0, 64], sizes = [2, 32], strides = [1, 1]} : vector<2x96xf32> to vector<2x32xf32>
    %460 = vector.extract_strided_slice %448 {offsets = [0, 64], sizes = [2, 32], strides = [1, 1]} : vector<2x96xf32> to vector<2x32xf32>
    %461 = arith.addf %460, %14 : vector<2x32xf32>
    %462 = arith.mulf %457, %461 : vector<2x32xf32>
    %463 = arith.addf %459, %462 : vector<2x32xf32>
    %464 = math.tanh %463 : vector<2x32xf32>
    %cst_132 = arith.constant 1.000000e+00 : f32
    %465 = vector.broadcast %cst_132 : f32 to vector<2x32xf32>
    %466 = arith.subf %465, %458 : vector<2x32xf32>
    %467 = arith.mulf %466, %464 : vector<2x32xf32>
    %468 = arith.mulf %458, %412 : vector<2x32xf32>
    %469 = arith.addf %467, %468 : vector<2x32xf32>
    %470 = vector.shape_cast %469 : vector<2x32xf32> to vector<1x2x32xf32>
    %471 = arith.index_cast %444 : i32 to index
    %c0_133 = arith.constant 0 : index
    %c0_134 = arith.constant 0 : index
    %472 = vector.load %arg9[%471, %c0_133, %c0_134] : memref<8x2x32xf32, #tpu.memory_space<vmem>>, vector<1x2x32xf32>
    tpu.vector_store %arg9[%471, %c0_133, %c0_134], %470 {strides = array<i32>} : memref<8x2x32xf32, #tpu.memory_space<vmem>>, vector<1x2x32xf32>,
    %c8_i32 = arith.constant 8 : i32
    %c0_135 = arith.constant 0 : index
    %c0_136 = arith.constant 0 : index
    %473 = vector.load %arg11[%c0_135, %c0_136] : memref<2x32xf32, #tpu.memory_space<vmem>>, vector<2x32xf32>
    tpu.vector_store %arg11[%c0_135, %c0_136], %440 {strides = array<i32>} : memref<2x32xf32, #tpu.memory_space<vmem>>, vector<2x32xf32>,
    %c0_137 = arith.constant 0 : index
    %c0_138 = arith.constant 0 : index
    %474 = vector.load %arg12[%c0_137, %c0_138] : memref<2x32xf32, #tpu.memory_space<vmem>>, vector<2x32xf32>
    tpu.vector_store %arg12[%c0_137, %c0_138], %469 {strides = array<i32>} : memref<2x32xf32, #tpu.memory_space<vmem>>, vector<2x32xf32>,
    %c0_i32_139 = arith.constant 0 : i32
    %475 = arith.cmpi eq, %arg0, %c0_i32_139 : i32
    %476 = arith.extui %475 : i1 to i32
    %c0_i32_140 = arith.constant 0 : i32
    %477 = arith.cmpi ne, %476, %c0_i32_140 : i32
    scf.if %477 {
      %c0_141 = arith.constant 0 : index
      %c0_142 = arith.constant 0 : index
      %478 = vector.load %arg5[%c0_141, %c0_142] : memref<32x32xf32, #tpu.memory_space<vmem>>, vector<32x32xf32>
      %cst_143 = arith.constant dense<0.000000e+00> : vector<2x32xf32>
      %479 = tpu.matmul %440, %478, %cst_143 {dimension_numbers = #tpu.dot_dimension_numbers<[1], [0], [0], [1], [0, 0, 1, 1], [], []>} : vector<2x32xf32>, vector<32x32xf32>, vector<2x32xf32> -> vector<2x32xf32>
      %c0_144 = arith.constant 0 : index
      %c0_145 = arith.constant 0 : index
      %480 = vector.load %arg6[%c0_144, %c0_145] : memref<32x32xf32, #tpu.memory_space<vmem>>, vector<32x32xf32>
      %cst_146 = arith.constant dense<0.000000e+00> : vector<2x32xf32>
      %481 = tpu.matmul %469, %480, %cst_146 {dimension_numbers = #tpu.dot_dimension_numbers<[1], [0], [0], [1], [0, 0, 1, 1], [], []>} : vector<2x32xf32>, vector<32x32xf32>, vector<2x32xf32> -> vector<2x32xf32>
      %482 = arith.addf %479, %481 : vector<2x32xf32>
      %c0_147 = arith.constant 0 : index
      %c0_148 = arith.constant 0 : index
      %483 = vector.load %arg7[%c0_147, %c0_148] : memref<1x32xf32, #tpu.memory_space<vmem>>, vector<1x32xf32>
      %484 = vector.broadcast %483 : vector<1x32xf32> to vector<2x32xf32>
      %485 = arith.addf %482, %484 : vector<2x32xf32>
      %c0_149 = arith.constant 0 : index
      %c0_150 = arith.constant 0 : index
      %486 = vector.load %arg10[%c0_149, %c0_150] : memref<2x32xf32, #tpu.memory_space<vmem>>, vector<2x32xf32>
      tpu.vector_store %arg10[%c0_149, %c0_150], %485 {strides = array<i32>} : memref<2x32xf32, #tpu.memory_space<vmem>>, vector<2x32xf32>,
    } else {
    }
    return
  }
  func.func @transform_0(%arg0: i32) -> (i32, i32, i32) {
    %c0_i32 = arith.constant 0 : i32
    %c0_i32_0 = arith.constant 0 : i32
    %c0_i32_1 = arith.constant 0 : i32
    return %arg0, %c0_i32, %c0_i32_0 : i32, i32, i32
  }
  func.func @transform_1(%arg0: i32) -> (i32, i32, i32) {
    %c0_i32 = arith.constant 0 : i32
    %0 = arith.subi %c0_i32, %arg0 : i32
    %c0_i32_0 = arith.constant 0 : i32
    %c0_i32_1 = arith.constant 0 : i32
    %c0_i32_2 = arith.constant 0 : i32
    return %0, %c0_i32_0, %c0_i32_1 : i32, i32, i32
  }
  func.func @transform_2(%arg0: i32) -> (i32, i32, i32) {
    %c0_i32 = arith.constant 0 : i32
    %c0_i32_0 = arith.constant 0 : i32
    %c0_i32_1 = arith.constant 0 : i32
    %c0_i32_2 = arith.constant 0 : i32
    return %c0_i32, %c0_i32_0, %c0_i32_1 : i32, i32, i32
  }
  func.func @transform_3(%arg0: i32) -> (i32, i32, i32) {
    %c0_i32 = arith.constant 0 : i32
    %c0_i32_0 = arith.constant 0 : i32
    %c0_i32_1 = arith.constant 0 : i32
    %c0_i32_2 = arith.constant 0 : i32
    return %c0_i32, %c0_i32_0, %c0_i32_1 : i32, i32, i32
  }
  func.func @transform_4(%arg0: i32) -> (i32, i32) {
    %c0_i32 = arith.constant 0 : i32
    %c0_i32_0 = arith.constant 0 : i32
    %c0_i32_1 = arith.constant 0 : i32
    return %c0_i32, %c0_i32_0 : i32, i32
  }
  func.func @transform_5(%arg0: i32) -> (i32, i32) {
    %c0_i32 = arith.constant 0 : i32
    %c0_i32_0 = arith.constant 0 : i32
    %c0_i32_1 = arith.constant 0 : i32
    return %c0_i32, %c0_i32_0 : i32, i32
  }
  func.func @transform_6(%arg0: i32) -> (i32, i32) {
    %c0_i32 = arith.constant 0 : i32
    %c0_i32_0 = arith.constant 0 : i32
    %c0_i32_1 = arith.constant 0 : i32
    return %c0_i32, %c0_i32_0 : i32, i32
  }
  func.func @transform_7(%arg0: i32) -> (i32, i32, i32) {
    %c0_i32 = arith.constant 0 : i32
    %c0_i32_0 = arith.constant 0 : i32
    %c0_i32_1 = arith.constant 0 : i32
    return %arg0, %c0_i32, %c0_i32_0 : i32, i32, i32
  }
  func.func @transform_8(%arg0: i32) -> (i32, i32, i32) {
    %c0_i32 = arith.constant 0 : i32
    %0 = arith.subi %c0_i32, %arg0 : i32
    %c0_i32_0 = arith.constant 0 : i32
    %c0_i32_1 = arith.constant 0 : i32
    %c0_i32_2 = arith.constant 0 : i32
    return %0, %c0_i32_0, %c0_i32_1 : i32, i32, i32
  }
  func.func @transform_9(%arg0: i32) -> (i32, i32) {
    %c0_i32 = arith.constant 0 : i32
    %c0_i32_0 = arith.constant 0 : i32
    %c0_i32_1 = arith.constant 0 : i32
    return %c0_i32, %c0_i32_0 : i32, i32
  }
}

</mosaic_0001>

<bundles_post_ra>
// kernel: encoder_forward.2
= control target key start
LH: loop header
LB: loop body
LE: loop exit
PB: predicated region body
PF: predicated region fallthrough
CT: control target
= control target key end

     0   :  { %vm30_vm0 = vcmask 130048   ;;  %vm60_vm1 = vcmask 785408   ;;  %s183_s1 = inlined_call_operand.vmem [shape: f32[16,96], index: 1, kind: input, shape index: {}]   ;;  %s184_s2 = inlined_call_operand.vmem [shape: f32[16,96], index: 2, kind: input, shape index: {}]   ;;  %s185_s0 = inlined_call_operand.vmem [shape: f32[16,16], index: 0, kind: input, shape index: {}]   ;;  %s186_s3 = inlined_call_operand.vmem [shape: f32[1,96], index: 3, kind: input, shape index: {}]   ;;  %s187_s4 = inlined_call_operand.vmem [shape: f32[1,96], index: 4, kind: input, shape index: {}]   ;;  %s188_s5 = inlined_call_operand.vmem [shape: f32[16,96], index: 5, kind: output, shape index: {0}]   ;;  %s189_s6 = inlined_call_operand.vmem [shape: f32[16,96], index: 6, kind: output, shape index: {1}]  }
   0x1   :  { %v25_v0 = vld [vmem:[%s183_s1 + $0x8] sm:$0xff]  ;;  %v24_v2 = vld [vmem:[%s183_s1] sm:$0xff] }
   0x2   :  { %v64_v1 = vld [vmem:[%s184_s2 + $0x8] sm:$0xff]  ;;  %106 = vmatpush.msra.mxu2 %v25_v0  ;;  %v63_v3 = vld [vmem:[%s184_s2] sm:$0xff]  ;;  %51 = vmatpush.msra.mxu0 %v25_v0 }
   0x3   :  { %108 = vmatpush.msra.mxu3 %v64_v1  ;;  %v23_v4 = vld [vmem:[%s185_s0 + $0x8] sm:$0xff]  ;;  %83 = vmatpush.msra.mxu1 %v64_v1  ;;  %v22_v5 = vld [vmem:[%s185_s0] sm:$0xff] }
   0x4   :  { %107 = vmatpush.msra.mxu2 %v24_v2  ;;  %52 = vmatpush.msra.mxu0 %v24_v2  ;;  %v110_v6 = vld [vmem:[%s186_s3] ss:$0 sm:$0xff] }
   0x5   :  { %109 = vmatpush.msra.mxu3 %v63_v3  ;;  %103 = vmatmul.msk.f32.vlgmr.msra.gmra.mxu2 %vm30_vm0, %v23_v4  ;;  %v111_v7 = vld [vmem:[%s187_s4] ss:$0 sm:$0xff] }
   0x6   :  { %105 = vmatmul.msk.f32.vlgmr.msra.gmra.mxu3 %vm30_vm0, %v23_v4  ;;  %84 = vmatpush.msra.mxu1 %v63_v3 }
   0x7   :  { %102 = vmatmul.msk.f32.vlgmr.msra.gmra.mxu0 %vm30_vm0, %v22_v5  ;;  %104 = vmatmul.msk.f32.vlgmr.msra.gmra.mxu1 %vm30_vm0, %v22_v5 }
  0x84   :  { %v54_v8 = vpop.f32.mrf.mxu0  ;;  %v86_v9 = vpop.f32.mrf.mxu1 }
  0x85   :  { %v55_v10 = vadd.f32 %v110_v6, %v54_v8  ;;  %v87_v11 = vadd.f32 %v111_v7, %v86_v9 }
  0x87   :  { %61 = vst.msk [vmem:[%s188_s5] sm:$0xff] %vm60_vm1, %v55_v10 }
  0x88   :  { %v57_v12 = vpop.f32.mrf.mxu2  ;;  %92 = vst.msk [vmem:[%s189_s6] sm:$0xff] %vm60_vm1, %v87_v11 }
  0x89   :  { %v89_v13 = vpop.f32.mrf.mxu3  ;;  %v58_v14 = vadd.f32 %v110_v6, %v57_v12 }
  0x8a   :  { %v90_v15 = vadd.f32 %v111_v7, %v89_v13 }
  0x8b   :  { %62 = vst.msk [vmem:[%s188_s5 + $0x8] sm:$0xff] %vm60_vm1, %v58_v14 }
  0x8c   :  { %93 = vst.msk [vmem:[%s189_s6 + $0x8] sm:$0xff] %vm60_vm1, %v90_v15 }

// kernel: encoder_forward.3
= control target key start
LH: loop header
LB: loop body
LE: loop exit
PB: predicated region body
PF: predicated region fallthrough
CT: control target
= control target key end

     0   :  { %vm70_vm0 = vcmask 254976   ;;  %v1535_v2 = vmov 0.0   ;;  %s2013_s0 = inlined_call_operand.vmem [shape: f32[8,2,96], index: 0, kind: input, shape index: {}]   ;;  %s2014_s1 = inlined_call_operand.vmem [shape: f32[8,2,96], index: 1, kind: input, shape index: {}]   ;;  %s2015_s2 = inlined_call_operand.vmem [shape: f32[2,32,96], index: 2, kind: input, shape index: {}]   ;;  %s2016_s3 = inlined_call_operand.vmem [shape: f32[2,1,32], index: 3, kind: input, shape index: {}]   ;;  %s2017_s4 = inlined_call_operand.vmem [shape: f32[32,32], index: 4, kind: input, shape index: {}]   ;;  %s2018_s5 = inlined_call_operand.vmem [shape: f32[32,32], index: 5, kind: input, shape index: {}]   ;;  %s2019_s6 = inlined_call_operand.vmem [shape: f32[1,32], index: 6, kind: input, shape index: {}]   ;;  %s2020_s7 = inlined_call_operand.vmem [shape: f32[8,2,32], index: 7, kind: output, shape index: {0}]   ;;  %s2021_s8 = inlined_call_operand.vmem [shape: f32[8,2,32], index: 8, kind: output, shape index: {1}]   ;;  %s2022_s9 = inlined_call_operand.hbm [shape: f32[2,32], index: 9, kind: output, shape index: {2}]  }
   0x1   :  { %v1593_v0 = vld [vmem:[%s2015_s2 + $0x18] sm:$0xff]  ;;  %v1598_v1 = vld [vmem:[%s2015_s2 + $0x10] sm:$0xff]  ;;  %71 = vst.msk [vmem:[#allocation2] sm:$0x3] %vm70_vm0, %v1535_v2  ;;  %v1616_v5 = vld [vmem:[%s2015_s2 + $0x8] sm:$0xff] }
   0x2   :  { %108 = vmatpush.msra.mxu0 %v1593_v0  ;;  %v1605_v3 = vld [vmem:[%s2015_s2 + $0x38] sm:$0xff]  ;;  %v1610_v4 = vld [vmem:[%s2015_s2 + $0x30] sm:$0xff]  ;;  %261 = vmatpush.msra.mxu2 %v1593_v0  ;;  %72 = vst.msk [vmem:[#allocation3] sm:$0x3] %vm70_vm0, %v1535_v2  ;;  %v1625_v6 = vld [vmem:[%s2015_s2 + $0x28] sm:$0xff] }
   0x3   :  { %185 = vmatpush.msra.mxu1 %v1605_v3  ;;  %331 = vmatpush.msra.mxu3 %v1605_v3  ;;  %v1410_v7 = vld [vmem:[%s2016_s3] ss:$0 sm:$0xff] }
   0x4   :  { %109 = vmatpush.msra.mxu0 %v1598_v1  ;;  %262 = vmatpush.msra.mxu2 %v1598_v1  ;;  %v1634_v8 = vld [vmem:[%s2015_s2] sm:$0xff] }
   0x5   :  { %186 = vmatpush.msra.mxu1 %v1610_v4  ;;  %332 = vmatpush.msra.mxu3 %v1610_v4 }
   0x6   :  { %15 = vsyncpa [#allocation5], 0  ;;  %110 = vmatpush.msra.mxu0 %v1616_v5  ;;  %v1642_v9 = vld [vmem:[%s2015_s2 + $0x20] sm:$0xff]  ;;  %s1536_s27 = smov 64   ;;  %vm92_vm1 = vcmask 261120   ;;  %263 = vmatpush.msra.mxu2 %v1616_v5  ;;  %s1538_s12 = smov 96  }
   0x7   :  { %136 = vrot.lane.b32.xlu0 %v1410_v7, %s1536_s27  ;;  %187 = vmatpush.msra.mxu1 %v1625_v6  ;;  %v1411_v12 = vld [vmem:[%s2016_s3 + $0x1] ss:$0 sm:$0xff]  ;;  %s1537_s3 = smov 32   ;;  %v1345_v22 = vld [vmem:[%s2014_s1 + $0xe] sm:$0x3]  ;;  %s1305_s25 = sshll.u32 %s2022_s9, 4  ;;  %s1306_s25 = int_to_ptr.hbm [resolvable:$true] %s1305_s25 }
   0x8   :  { %333 = vmatpush.msra.mxu3 %v1625_v6  ;;  %111 = vmatpush.msra.mxu0 %v1634_v8  ;;  %v89_v10 = vld [vmem:[#allocation2] sm:$0x3] }
   0x9   :  { %188 = vmatpush.msra.mxu1 %v1642_v9  ;;  %1343 = vmatmul.msk.f32.vlgmr.msra.gmra.mxu0 %vm92_vm1, %v89_v10  ;;  %v1652_v11 = vld [vmem:[#allocation3] sm:$0x3]  ;;  %v91_v19 = vld [vmem:[%s2013_s0] sm:$0x3] }
   0xa   :  { %334 = vmatpush.msra.mxu3 %v1642_v9  ;;  %264 = vmatpush.msra.mxu2 %v1634_v8 }
   0xb   :  { %1346 = vmatmul.msk.f32.vlgmr.msra.gmra.mxu1 %vm92_vm1, %v1652_v11  ;;  %401 = vmatpush.msrb.mxu0 %v1593_v0 }
   0xc   :  { %471 = vmatpush.msrb.mxu1 %v1605_v3  ;;  %541 = vmatpush.msrb.mxu2 %v1593_v0 }
   0xd   :  { %402 = vmatpush.msrb.mxu0 %v1598_v1  ;;  %611 = vmatpush.msrb.mxu3 %v1605_v3 }
   0xe   :  { %472 = vmatpush.msrb.mxu1 %v1610_v4  ;;  %542 = vmatpush.msrb.mxu2 %v1598_v1 }
   0xf   :  { %213 = vrot.lane.b32.xlu0 %v1411_v12, %s1536_s27  ;;  %403 = vmatpush.msrb.mxu0 %v1616_v5 }
  0x10   :  { %473 = vmatpush.msrb.mxu1 %v1625_v6  ;;  %612 = vmatpush.msrb.mxu3 %v1610_v4 }
  0x11   :  { %404 = vmatpush.msrb.mxu0 %v1634_v8  ;;  %543 = vmatpush.msrb.mxu2 %v1616_v5 }
  0x12   :  { %474 = vmatpush.msrb.mxu1 %v1642_v9  ;;  %613 = vmatpush.msrb.mxu3 %v1625_v6 }
  0x13   :  { %544 = vmatpush.msrb.mxu2 %v1634_v8  ;;  %681 = vmatpush.msra.mxu0 %v1593_v0 }
  0x14   :  { %751 = vmatpush.msra.mxu1 %v1605_v3  ;;  %614 = vmatpush.msrb.mxu3 %v1642_v9 }
  0x15   :  { %682 = vmatpush.msra.mxu0 %v1598_v1 }
  0x16   :  { %752 = vmatpush.msra.mxu1 %v1610_v4 }
  0x17   :  { %683 = vmatpush.msra.mxu0 %v1616_v5 }
  0x18   :  { %753 = vmatpush.msra.mxu1 %v1625_v6 }
  0x19   :  { %684 = vmatpush.msra.mxu0 %v1634_v8 }
  0x1a   :  { %754 = vmatpush.msra.mxu1 %v1642_v9 }
  0x79   :  { %v1685_v13 = vpop.permute.xlu0 %136 }
  0x81   :  { %v1689_v16 = vpop.permute.xlu0 %213 }
  0x86   :  { %v113_v14 = vpop.f32.mrf.mxu0 }
  0x87   :  { %v139_v15 = vadd.f32 %v1685_v13, %v113_v14  ;;  %v116_v20 = vadd.f32 %v113_v14, %v91_v19 }
  0x88   :  { %v190_v17 = vpop.f32.mrf.mxu1 }
  0x89   :  { %141 = vrot.lane.b32.xlu1 %v139_v15, %s1536_s27  ;;  %v216_v18 = vadd.f32 %v1689_v16, %v190_v17  ;;  %v1344_v21 = vmul.f32 -1.442695, %v116_v20  ;;  %v193_v23 = vadd.f32 %v1345_v22, %v190_v17 }
  0x8b   :  { %1413 = vpow2.f32 %v1344_v21  ;;  %v1347_v24 = vmul.f32 -1.442695, %v193_v23  ;;  %v1353_v23 = vld [vmem:[%s2014_s1 + $0xc] sm:$0x3] }
  0x8d   :  { %1415 = vpow2.f32 %v1347_v24 }
  0x91   :  { %218 = vrot.lane.b32.xlu1 %v216_v18, %s1536_s27  ;;  %v1414_v25 = vpop.eup %1413 }
  0x92   :  { %v120_v26 = vadd.f32 1.0, %v1414_v25 }
  0x93   :  { %v1416_v27 = vpop.eup %1415 }
  0x94   :  { %1417 = vrcp.f32 %v120_v26  ;;  %v197_v28 = vadd.f32 1.0, %v1416_v27  ;;  %v132_v37 = vand.u32 2147483648, %v120_v26  ;;  %vm126_vm3 = vweird.f32 %v120_v26 }
  0x95   :  { %v130_v38 = vand.u32 2147483647, %v120_v26 }
  0x96   :  { %1419 = vrcp.f32 %v197_v28  ;;  %v133_v41 = vor.u32 1.1754944e-38, %v132_v37  ;;  %vm203_vm6 = vweird.f32 %v197_v28  ;;  %v209_v44 = vand.u32 2147483648, %v197_v28 }
  0x97   :  { %vm131_vm5 = vcmp.eq.f32.partialorder %v130_v38, 8.507059e+37  ;;  %v207_v47 = vand.u32 2147483647, %v197_v28 }
  0x98   :  { %v210_v48 = vor.u32 1.1754944e-38, %v209_v44 }
  0x99   :  { %157 = vrot.lane.b32.xlu1 %v89_v10, %s1537_s3  ;;  %vm208_vm9 = vcmp.eq.f32.partialorder %v207_v47, 8.507059e+37 }
  0x9a   :  { %v1418_v29 = vpop.eup %1417 }
  0x9b   :  { %v122_v30 = vmul.f32 %v1418_v29, %v120_v26  ;;  %vm127_vm2 = vweird.f32 %v1418_v29  ;;  %v1349_v26 = vld [vmem:[%s2013_s0 + $0x2] sm:$0x3] }
  0x9c   :  { %v1420_v32 = vpop.eup %1419  ;;  %vm128_vm4 = vmor %vm126_vm3, %vm127_vm2 }
  0x9d   :  { %v123_v31 = vsub.f32 1.0, %v122_v30  ;;  %v199_v34 = vmul.f32 %v1420_v32, %v197_v28  ;;  %vm204_vm7 = vweird.f32 %v1420_v32 }
  0x9e   :  { %vm205_vm8 = vmor %vm203_vm6, %vm204_vm7 }
  0x9f   :  { %v124_v33 = vmul.f32 %v1418_v29, %v123_v31  ;;  %v200_v36 = vsub.f32 1.0, %v199_v34 }
  0xa1   :  { %v125_v35 = vadd.f32 %v1418_v29, %v124_v33  ;;  %v201_v40 = vmul.f32 %v1420_v32, %v200_v36 }
  0xa3   :  { %v129_v39 = vsel %vm128_vm4, %v1418_v29, %v125_v35  ;;  %v202_v46 = vadd.f32 %v1420_v32, %v201_v40 }
  0xa4   :  { %v134_v43 = vsel %vm131_vm5, %v133_v41, %v129_v39 }
  0xa5   :  { %v206_v49 = vsel %vm205_vm8, %v1420_v32, %v202_v46  ;;  %v151_v60 = vsub.f32 1.0, %v134_v43 }
  0xa6   :  { %v211_v50 = vsel %vm208_vm9, %v210_v48, %v206_v49 }
  0xa7   :  { %v228_v10 = vsub.f32 1.0, %v211_v50 }
  0xfb   :  { %v142_v42 = vpop.permute.xlu1 %141 }
  0xfc   :  { %v144_v45 = vmul.f32 %v142_v42, %v134_v43 }
  0xfe   :  { %146 = vrot.lane.b32.xlu2 %v144_v45, %s1536_s27 }
 0x103   :  { %v219_v51 = vpop.permute.xlu1 %218 }
 0x104   :  { %v221_v52 = vmul.f32 %v219_v51, %v211_v50 }
 0x106   :  { %223 = vrot.lane.b32.xlu2 %v221_v52, %s1536_s27 }
 0x10b   :  { %v158_v59 = vpop.permute.xlu1 %157 }
 0x10c   :  { %v160_v62 = vmul.f32 %v158_v59, %v134_v43 }
 0x158   :  { %v147_v53 = vpop.permute.xlu2 %146 }
 0x159   :  { %v149_v54 = vadd.f32 %v147_v53, %v91_v19 }
 0x15b   :  { %1421 = vtanh.f32 %v149_v54 }
 0x160   :  { %v224_v55 = vpop.permute.xlu2 %223 }
 0x161   :  { %v1422_v56 = vpop.eup %1421  ;;  %v226_v57 = vadd.f32 %v1345_v22, %v224_v55 }
 0x162   :  { %153 = vrot.lane.b32.xlu0 %v1422_v56, %s1538_s12 }
 0x163   :  { %1423 = vtanh.f32 %v226_v57 }
 0x169   :  { %v1424_v58 = vpop.eup %1423 }
 0x16a   :  { %234 = vrot.lane.b32.xlu0 %v1652_v11, %s1537_s3  ;;  %230 = vrot.lane.b32.xlu2 %v1424_v58, %s1538_s12 }
 0x1c4   :  { %v231_v7 = vpop.permute.xlu2 %230 }
 0x1c5   :  { %v233_v14 = vmul.f32 %v231_v7, %v228_v10 }
 0x1d4   :  { %v154_v61 = vpop.permute.xlu0 %153 }
 0x1d5   :  { %v156_v63 = vmul.f32 %v154_v61, %v151_v60 }
 0x1d7   :  { %v1706_v2 = vadd.f32 %v160_v62, %v156_v63 }
 0x1d9   :  { %163 = vrot.lane.b32.xlu1 %v1706_v2, %s1538_s12 }
 0x1dc   :  { %v235_v12 = vpop.permute.xlu0 %234 }
 0x1dd   :  { %v237_v15 = vmul.f32 %v235_v12, %v211_v50 }
 0x1df   :  { %v1710_v17 = vadd.f32 %v237_v15, %v233_v14 }
 0x1e1   :  { %240 = vrot.lane.b32.xlu2 %v1710_v17, %s1538_s12 }
 0x23b   :  { %v241_v11 = vpop.permute.xlu2 %240 }
 0x23c   :  { %1348 = vst.msk [vmem:[%s2021_s8 + $0xe] sm:$0x3] %vm70_vm0, %v241_v11  ;;  %1354 = vmatmul.msk.f32.vlgmr.msra.gmra.mxu3 %vm92_vm1, %v241_v11 }
 0x23d   :  { %891 = vmatpush.msra.mxu3 %v1605_v3 }
 0x23f   :  { %892 = vmatpush.msra.mxu3 %v1610_v4 }
 0x241   :  { %893 = vmatpush.msra.mxu3 %v1625_v6 }
 0x243   :  { %894 = vmatpush.msra.mxu3 %v1642_v9 }
 0x24b   :  { %v164_v18 = vpop.permute.xlu1 %163 }
 0x24c   :  { %167 = vst.msk [vmem:[%s2020_s7] sm:$0x3] %vm70_vm0, %v164_v18  ;;  %1350 = vmatmul.msk.f32.vlgmr.msra.gmra.mxu2 %vm92_vm1, %v164_v18 }
 0x24d   :  { %821 = vmatpush.msra.mxu2 %v1593_v0 }
 0x24f   :  { %822 = vmatpush.msra.mxu2 %v1598_v1 }
 0x251   :  { %823 = vmatpush.msra.mxu2 %v1616_v5 }
 0x253   :  { %824 = vmatpush.msra.mxu2 %v1634_v8 }
 0x2bf   :  { %v336_v19 = vpop.f32.mrf.mxu3 }
 0x2c0   :  { %v359_v20 = vadd.f32 %v336_v19, %v1689_v16  ;;  %v339_v24 = vadd.f32 %v1353_v23, %v336_v19 }
 0x2c2   :  { %361 = vrot.lane.b32.xlu1 %v359_v20, %s1536_s27  ;;  %v1355_v25 = vmul.f32 -1.442695, %v339_v24 }
 0x2c4   :  { %1425 = vpow2.f32 %v1355_v25  ;;  %v1357_v25 = vld [vmem:[%s2013_s0 + $0x4] sm:$0x3] }
 0x2ca   :  { %v1426_v27 = vpop.eup %1425 }
 0x2cb   :  { %v343_v29 = vadd.f32 1.0, %v1426_v27 }
 0x2cd   :  { %1427 = vrcp.f32 %v343_v29  ;;  %v355_v39 = vand.u32 2147483648, %v343_v29  ;;  %vm349_vm11 = vweird.f32 %v343_v29  ;;  %v353_v40 = vand.u32 2147483647, %v343_v29 }
 0x2cf   :  { %v266_v21 = vpop.f32.mrf.mxu2  ;;  %v356_v43 = vor.u32 1.1754944e-38, %v355_v39  ;;  %vm354_vm13 = vcmp.eq.f32.partialorder %v353_v40, 8.507059e+37 }
 0x2d0   :  { %v289_v22 = vadd.f32 %v266_v21, %v1685_v13  ;;  %v269_v28 = vadd.f32 %v1349_v26, %v266_v21 }
 0x2d2   :  { %291 = vrot.lane.b32.xlu0 %v289_v22, %s1536_s27  ;;  %v1351_v30 = vmul.f32 -1.442695, %v269_v28  ;;  %v1361_v28 = vld [vmem:[%s2014_s1 + $0xa] sm:$0x3] }
 0x2d3   :  { %v1428_v31 = vpop.eup %1427 }
 0x2d4   :  { %1429 = vpow2.f32 %v1351_v30  ;;  %v345_v33 = vmul.f32 %v1428_v31, %v343_v29  ;;  %vm350_vm10 = vweird.f32 %v1428_v31 }
 0x2d5   :  { %vm351_vm12 = vmor %vm349_vm11, %vm350_vm10 }
 0x2d6   :  { %v346_v35 = vsub.f32 1.0, %v345_v33 }
 0x2d8   :  { %v347_v36 = vmul.f32 %v1428_v31, %v346_v35 }
 0x2da   :  { %v1430_v32 = vpop.eup %1429  ;;  %v348_v37 = vadd.f32 %v1428_v31, %v347_v36 }
 0x2db   :  { %v273_v34 = vadd.f32 1.0, %v1430_v32 }
 0x2dc   :  { %v352_v41 = vsel %vm351_vm12, %v1428_v31, %v348_v37 }
 0x2dd   :  { %1431 = vrcp.f32 %v273_v34  ;;  %v357_v45 = vsel %vm354_vm13, %v356_v43, %v352_v41  ;;  %v285_v50 = vand.u32 2147483648, %v273_v34  ;;  %vm279_vm15 = vweird.f32 %v273_v34 }
 0x2de   :  { %v283_v51 = vand.u32 2147483647, %v273_v34  ;;  %v371_v63 = vsub.f32 1.0, %v357_v45  ;;  %v377_v10 = vmul.f32 %v357_v45, %v1710_v17 }
 0x2df   :  { %v286_v53 = vor.u32 1.1754944e-38, %v285_v50 }
 0x2e0   :  { %vm284_vm3 = vcmp.eq.f32.partialorder %v283_v51, 8.507059e+37 }
 0x2e3   :  { %v1432_v38 = vpop.eup %1431 }
 0x2e4   :  { %v275_v42 = vmul.f32 %v1432_v38, %v273_v34  ;;  %vm280_vm14 = vweird.f32 %v1432_v38 }
 0x2e5   :  { %vm281_vm2 = vmor %vm279_vm15, %vm280_vm14 }
 0x2e6   :  { %v276_v47 = vsub.f32 1.0, %v275_v42 }
 0x2e8   :  { %v277_v48 = vmul.f32 %v1432_v38, %v276_v47 }
 0x2ea   :  { %v278_v49 = vadd.f32 %v1432_v38, %v277_v48 }
 0x2ec   :  { %v282_v52 = vsel %vm281_vm2, %v1432_v38, %v278_v49 }
 0x2ed   :  { %v287_v54 = vsel %vm284_vm3, %v286_v53, %v282_v52 }
 0x2ee   :  { %v301_v15 = vsub.f32 1.0, %v287_v54  ;;  %v307_v18 = vmul.f32 %v287_v54, %v1706_v2 }
 0x334   :  { %v362_v44 = vpop.permute.xlu1 %361 }
 0x335   :  { %v364_v46 = vmul.f32 %v362_v44, %v357_v45 }
 0x337   :  { %366 = vrot.lane.b32.xlu0 %v364_v46, %s1536_s27 }
 0x344   :  { %v292_v55 = vpop.permute.xlu0 %291 }
 0x345   :  { %v294_v56 = vmul.f32 %v292_v55, %v287_v54 }
 0x347   :  { %296 = vrot.lane.b32.xlu2 %v294_v56, %s1536_s27 }
 0x3a1   :  { %v297_v57 = vpop.permute.xlu2 %296 }
 0x3a2   :  { %v299_v58 = vadd.f32 %v1349_v26, %v297_v57 }
 0x3a4   :  { %1433 = vtanh.f32 %v299_v58 }
 0x3a9   :  { %v367_v59 = vpop.permute.xlu0 %366 }
 0x3aa   :  { %v1434_v60 = vpop.eup %1433  ;;  %v369_v61 = vadd.f32 %v1353_v23, %v367_v59 }
 0x3ab   :  { %303 = vrot.lane.b32.xlu1 %v1434_v60, %s1538_s12 }
 0x3ac   :  { %1435 = vtanh.f32 %v369_v61 }
 0x3b2   :  { %v1436_v62 = vpop.eup %1435 }
 0x3b3   :  { %373 = vrot.lane.b32.xlu2 %v1436_v62, %s1538_s12 }
 0x40d   :  { %v374_v7 = vpop.permute.xlu2 %373 }
 0x40e   :  { %v376_v12 = vmul.f32 %v374_v7, %v371_v63 }
 0x410   :  { %v1747_v14 = vadd.f32 %v377_v10, %v376_v12 }
 0x412   :  { %380 = vrot.lane.b32.xlu1 %v1747_v14, %s1538_s12 }
 0x41d   :  { %v304_v11 = vpop.permute.xlu1 %303 }
 0x41e   :  { %v306_v19 = vmul.f32 %v304_v11, %v301_v15 }
 0x420   :  { %v1752_v20 = vadd.f32 %v307_v18, %v306_v19 }
 0x422   :  { %310 = vrot.lane.b32.xlu0 %v1752_v20, %s1538_s12 }
 0x484   :  { %v381_v21 = vpop.permute.xlu1 %380 }
 0x485   :  { %1356 = vst.msk [vmem:[%s2021_s8 + $0xc] sm:$0x3] %vm70_vm0, %v381_v21  ;;  %1362 = vmatmul.msk.f32.vlgmr.msrb.gmra.mxu1 %vm92_vm1, %v381_v21 }
 0x486   :  { %1031 = vmatpush.msrb.mxu1 %v1605_v3 }
 0x488   :  { %1032 = vmatpush.msrb.mxu1 %v1610_v4 }
 0x48a   :  { %1033 = vmatpush.msrb.mxu1 %v1625_v6 }
 0x48c   :  { %1034 = vmatpush.msrb.mxu1 %v1642_v9 }
 0x494   :  { %v311_v2 = vpop.permute.xlu0 %310 }
 0x495   :  { %1352 = vst.msk [vmem:[%s2020_s7 + $0x2] sm:$0x3] %vm70_vm0, %v311_v2  ;;  %1358 = vmatmul.msk.f32.vlgmr.msrb.gmra.mxu0 %vm92_vm1, %v311_v2 }
 0x496   :  { %961 = vmatpush.msrb.mxu0 %v1593_v0 }
 0x498   :  { %962 = vmatpush.msrb.mxu0 %v1598_v1 }
 0x49a   :  { %963 = vmatpush.msrb.mxu0 %v1616_v5 }
 0x49c   :  { %964 = vmatpush.msrb.mxu0 %v1634_v8 }
 0x502   :  { %v476_v17 = vpop.f32.mrf.mxu1 }
 0x503   :  { %v499_v22 = vadd.f32 %v476_v17, %v1689_v16  ;;  %v479_v29 = vadd.f32 %v1361_v28, %v476_v17 }
 0x505   :  { %501 = vrot.lane.b32.xlu0 %v499_v22, %s1536_s27  ;;  %v1363_v30 = vmul.f32 -1.442695, %v479_v29 }
 0x512   :  { %v406_v23 = vpop.f32.mrf.mxu0 }
 0x513   :  { %v429_v24 = vadd.f32 %v406_v23, %v1685_v13  ;;  %v409_v26 = vadd.f32 %v1357_v25, %v406_v23 }
 0x515   :  { %431 = vrot.lane.b32.xlu2 %v429_v24, %s1536_s27  ;;  %v1359_v27 = vmul.f32 -1.442695, %v409_v26 }
 0x517   :  { %1437 = vpow2.f32 %v1359_v27 }
 0x518   :  { %1439 = vpow2.f32 %v1363_v30 }
 0x51d   :  { %v1438_v31 = vpop.eup %1437 }
 0x51e   :  { %v413_v32 = vadd.f32 1.0, %v1438_v31  ;;  %v1440_v33 = vpop.eup %1439 }
 0x51f   :  { %v483_v34 = vadd.f32 1.0, %v1440_v33 }
 0x520   :  { %1441 = vrcp.f32 %v413_v32  ;;  %v425_v43 = vand.u32 2147483648, %v413_v32  ;;  %vm419_vm5 = vweird.f32 %v413_v32  ;;  %v423_v44 = vand.u32 2147483647, %v413_v32 }
 0x521   :  { %1443 = vrcp.f32 %v483_v34  ;;  %v495_v52 = vand.u32 2147483648, %v483_v34  ;;  %vm489_vm9 = vweird.f32 %v483_v34  ;;  %v493_v53 = vand.u32 2147483647, %v483_v34 }
 0x522   :  { %v426_v47 = vor.u32 1.1754944e-38, %v425_v43  ;;  %vm424_vm7 = vcmp.eq.f32.partialorder %v423_v44, 8.507059e+37 }
 0x523   :  { %v496_v55 = vor.u32 1.1754944e-38, %v495_v52  ;;  %vm494_vm11 = vcmp.eq.f32.partialorder %v493_v53, 8.507059e+37 }
 0x526   :  { %v1442_v35 = vpop.eup %1441 }
 0x527   :  { %v415_v36 = vmul.f32 %v1442_v35, %v413_v32  ;;  %v1444_v38 = vpop.eup %1443  ;;  %vm420_vm4 = vweird.f32 %v1442_v35 }
 0x528   :  { %v485_v40 = vmul.f32 %v1444_v38, %v483_v34  ;;  %vm421_vm6 = vmor %vm419_vm5, %vm420_vm4  ;;  %vm490_vm8 = vweird.f32 %v1444_v38 }
 0x529   :  { %v416_v37 = vsub.f32 1.0, %v415_v36  ;;  %vm491_vm10 = vmor %vm489_vm9, %vm490_vm8 }
 0x52a   :  { %v486_v42 = vsub.f32 1.0, %v485_v40 }
 0x52b   :  { %v417_v39 = vmul.f32 %v1442_v35, %v416_v37 }
 0x52c   :  { %v487_v46 = vmul.f32 %v1444_v38, %v486_v42 }
 0x52d   :  { %v418_v41 = vadd.f32 %v1442_v35, %v417_v39 }
 0x52e   :  { %v488_v51 = vadd.f32 %v1444_v38, %v487_v46 }
 0x52f   :  { %v422_v45 = vsel %vm421_vm6, %v1442_v35, %v418_v41 }
 0x530   :  { %v427_v48 = vsel %vm424_vm7, %v426_v47, %v422_v45  ;;  %v492_v54 = vsel %vm491_vm10, %v1444_v38, %v488_v51 }
 0x531   :  { %v497_v57 = vsel %vm494_vm11, %v496_v55, %v492_v54  ;;  %v441_v19 = vsub.f32 1.0, %v427_v48  ;;  %v447_v2 = vmul.f32 %v427_v48, %v1752_v20 }
 0x532   :  { %v511_v10 = vsub.f32 1.0, %v497_v57  ;;  %v517_v15 = vmul.f32 %v497_v57, %v1747_v14 }
 0x56f   :  { %v432_v49 = vpop.permute.xlu2 %431 }
 0x570   :  { %v434_v50 = vmul.f32 %v432_v49, %v427_v48 }
 0x572   :  { %436 = vrot.lane.b32.xlu1 %v434_v50, %s1536_s27 }
 0x577   :  { %v502_v56 = vpop.permute.xlu0 %501 }
 0x578   :  { %v504_v58 = vmul.f32 %v502_v56, %v497_v57 }
 0x57a   :  { %506 = vrot.lane.b32.xlu2 %v504_v58, %s1536_s27 }
 0x5d4   :  { %v507_v59 = vpop.permute.xlu2 %506 }
 0x5d5   :  { %v509_v60 = vadd.f32 %v1361_v28, %v507_v59 }
 0x5d7   :  { %1445 = vtanh.f32 %v509_v60 }
 0x5dd   :  { %v1446_v61 = vpop.eup %1445 }
 0x5de   :  { %513 = vrot.lane.b32.xlu1 %v1446_v61, %s1538_s12 }
 0x5e4   :  { %v437_v62 = vpop.permute.xlu1 %436 }
 0x5e5   :  { %v439_v63 = vadd.f32 %v1357_v25, %v437_v62 }
 0x5e7   :  { %1447 = vtanh.f32 %v439_v63 }
 0x5ed   :  { %v1448_v7 = vpop.eup %1447 }
 0x5ee   :  { %443 = vrot.lane.b32.xlu0 %v1448_v7, %s1538_s12 }
 0x650   :  { %v514_v12 = vpop.permute.xlu1 %513 }
 0x651   :  { %v516_v11 = vmul.f32 %v514_v12, %v511_v10 }
 0x653   :  { %v1789_v18 = vadd.f32 %v517_v15, %v516_v11 }
 0x655   :  { %520 = vrot.lane.b32.xlu0 %v1789_v18, %s1538_s12 }
 0x660   :  { %v444_v21 = vpop.permute.xlu0 %443 }
 0x661   :  { %v446_v17 = vmul.f32 %v444_v21, %v441_v19 }
 0x663   :  { %v1794_v22 = vadd.f32 %v447_v2, %v446_v17 }
 0x665   :  { %450 = vrot.lane.b32.xlu2 %v1794_v22, %s1538_s12 }
 0x6bf   :  { %v451_v23 = vpop.permute.xlu2 %450 }
 0x6c0   :  { %1360 = vst.msk [vmem:[%s2020_s7 + $0x4] sm:$0x3] %vm70_vm0, %v451_v23  ;;  %1366 = vmatmul.msk.f32.vlgmr.msrb.gmra.mxu2 %vm92_vm1, %v451_v23  ;;  %v1377_v23 = vld [vmem:[%s2014_s1 + $0x6] sm:$0x3] }
 0x6c1   :  { %1101 = vmatpush.msrb.mxu2 %v1593_v0 }
 0x6c3   :  { %1102 = vmatpush.msrb.mxu2 %v1598_v1 }
 0x6c5   :  { %1103 = vmatpush.msrb.mxu2 %v1616_v5 }
 0x6c7   :  { %v521_v14 = vpop.permute.xlu0 %520  ;;  %1104 = vmatpush.msrb.mxu2 %v1634_v8 }
 0x6c8   :  { %1364 = vst.msk [vmem:[%s2021_s8 + $0xa] sm:$0x3] %vm70_vm0, %v521_v14  ;;  %1370 = vmatmul.msk.f32.vlgmr.msrb.gmra.mxu3 %vm92_vm1, %v521_v14 }
 0x6c9   :  { %1170 = vmatpush.msrb.mxu3 %v1605_v3  ;;  %v1369_v3 = vld [vmem:[%s2014_s1 + $0x8] sm:$0x3] }
 0x6cb   :  { %1171 = vmatpush.msrb.mxu3 %v1610_v4 }
 0x6cd   :  { %1172 = vmatpush.msrb.mxu3 %v1625_v6  ;;  %v1365_v6 = vld [vmem:[%s2013_s0 + $0x6] sm:$0x3] }
 0x6cf   :  { %1173 = vmatpush.msrb.mxu3 %v1642_v9 }
 0x743   :  { %v546_v0 = vpop.f32.mrf.mxu2 }
 0x744   :  { %v569_v1 = vadd.f32 %v546_v0, %v1685_v13  ;;  %v549_v24 = vadd.f32 %v1365_v6, %v546_v0 }
 0x746   :  { %571 = vrot.lane.b32.xlu1 %v569_v1, %s1536_s27  ;;  %v1367_v26 = vmul.f32 -1.442695, %v549_v24  ;;  %v1373_v1 = vld [vmem:[%s2013_s0 + $0x8] sm:$0x3] }
 0x74b   :  { %v616_v5 = vpop.f32.mrf.mxu3 }
 0x74c   :  { %v639_v8 = vadd.f32 %v616_v5, %v1689_v16  ;;  %v619_v20 = vadd.f32 %v1369_v3, %v616_v5 }
 0x74e   :  { %641 = vrot.lane.b32.xlu2 %v639_v8, %s1536_s27  ;;  %v1371_v4 = vmul.f32 -1.442695, %v619_v20 }
 0x750   :  { %1449 = vpow2.f32 %v1371_v4 }
 0x756   :  { %v1450_v9 = vpop.eup %1449 }
 0x757   :  { %v623_v25 = vadd.f32 1.0, %v1450_v9 }
 0x759   :  { %1451 = vrcp.f32 %v623_v25  ;;  %v635_v35 = vand.u32 2147483648, %v623_v25  ;;  %vm629_vm13 = vweird.f32 %v623_v25  ;;  %v633_v36 = vand.u32 2147483647, %v623_v25 }
 0x75a   :  { %1453 = vpow2.f32 %v1367_v26 }
 0x75b   :  { %v636_v39 = vor.u32 1.1754944e-38, %v635_v35  ;;  %vm634_vm15 = vcmp.eq.f32.partialorder %v633_v36, 8.507059e+37 }
 0x75f   :  { %v1452_v27 = vpop.eup %1451 }
 0x760   :  { %v1454_v28 = vpop.eup %1453  ;;  %v625_v29 = vmul.f32 %v1452_v27, %v623_v25  ;;  %vm630_vm12 = vweird.f32 %v1452_v27 }
 0x761   :  { %v553_v30 = vadd.f32 1.0, %v1454_v28  ;;  %vm631_vm14 = vmor %vm629_vm13, %vm630_vm12 }
 0x762   :  { %v626_v31 = vsub.f32 1.0, %v625_v29 }
 0x763   :  { %1455 = vrcp.f32 %v553_v30  ;;  %v565_v46 = vand.u32 2147483648, %v553_v30  ;;  %vm559_vm3 = vweird.f32 %v553_v30  ;;  %v563_v47 = vand.u32 2147483647, %v553_v30 }
 0x764   :  { %v627_v32 = vmul.f32 %v1452_v27, %v626_v31 }
 0x765   :  { %v566_v49 = vor.u32 1.1754944e-38, %v565_v46  ;;  %vm564_vm5 = vcmp.eq.f32.partialorder %v563_v47, 8.507059e+37 }
 0x766   :  { %v628_v33 = vadd.f32 %v1452_v27, %v627_v32 }
 0x768   :  { %v632_v37 = vsel %vm631_vm14, %v1452_v27, %v628_v33 }
 0x769   :  { %v1456_v34 = vpop.eup %1455  ;;  %v637_v40 = vsel %vm634_vm15, %v636_v39, %v632_v37 }
 0x76a   :  { %v555_v38 = vmul.f32 %v1456_v34, %v553_v30  ;;  %vm560_vm2 = vweird.f32 %v1456_v34  ;;  %v651_v7 = vsub.f32 1.0, %v637_v40  ;;  %v657_v12 = vmul.f32 %v637_v40, %v1789_v18 }
 0x76b   :  { %vm561_vm4 = vmor %vm559_vm3, %vm560_vm2 }
 0x76c   :  { %v556_v43 = vsub.f32 1.0, %v555_v38 }
 0x76e   :  { %v557_v44 = vmul.f32 %v1456_v34, %v556_v43 }
 0x770   :  { %v558_v45 = vadd.f32 %v1456_v34, %v557_v44 }
 0x772   :  { %v562_v48 = vsel %vm561_vm4, %v1456_v34, %v558_v45 }
 0x773   :  { %v567_v51 = vsel %vm564_vm5, %v566_v49, %v562_v48 }
 0x774   :  { %v581_v59 = vsub.f32 1.0, %v567_v51  ;;  %v587_v61 = vmul.f32 %v567_v51, %v1794_v22 }
 0x7a8   :  { %v642_v41 = vpop.permute.xlu2 %641 }
 0x7a9   :  { %v644_v42 = vmul.f32 %v642_v41, %v637_v40 }
 0x7ab   :  { %646 = vrot.lane.b32.xlu1 %v644_v42, %s1536_s27 }
 0x7b8   :  { %v572_v50 = vpop.permute.xlu1 %571 }
 0x7b9   :  { %v574_v52 = vmul.f32 %v572_v50, %v567_v51 }
 0x7bb   :  { %576 = vrot.lane.b32.xlu0 %v574_v52, %s1536_s27 }
 0x81d   :  { %v647_v53 = vpop.permute.xlu1 %646 }
 0x81e   :  { %v649_v54 = vadd.f32 %v1369_v3, %v647_v53 }
 0x820   :  { %1457 = vtanh.f32 %v649_v54 }
 0x826   :  { %v1458_v55 = vpop.eup %1457 }
 0x827   :  { %653 = vrot.lane.b32.xlu0 %v1458_v55, %s1538_s12 }
 0x82d   :  { %v577_v56 = vpop.permute.xlu0 %576 }
 0x82e   :  { %v579_v57 = vadd.f32 %v1365_v6, %v577_v56 }
 0x830   :  { %1459 = vtanh.f32 %v579_v57 }
 0x836   :  { %v1460_v58 = vpop.eup %1459 }
 0x837   :  { %583 = vrot.lane.b32.xlu2 %v1460_v58, %s1538_s12 }
 0x891   :  { %v584_v60 = vpop.permute.xlu2 %583 }
 0x892   :  { %v586_v62 = vmul.f32 %v584_v60, %v581_v59 }
 0x894   :  { %v1831_v63 = vadd.f32 %v587_v61, %v586_v62 }
 0x896   :  { %590 = vrot.lane.b32.xlu1 %v1831_v63, %s1538_s12 }
 0x899   :  { %v654_v10 = vpop.permute.xlu0 %653 }
 0x89a   :  { %v656_v15 = vmul.f32 %v654_v10, %v651_v7 }
 0x89c   :  { %v1836_v11 = vadd.f32 %v657_v12, %v656_v15 }
 0x89e   :  { %660 = vrot.lane.b32.xlu2 %v1836_v11, %s1538_s12 }
 0x8f8   :  { %v661_v19 = vpop.permute.xlu2 %660 }
 0x8f9   :  { %1372 = vst.msk [vmem:[%s2021_s8 + $0x8] sm:$0x3] %vm70_vm0, %v661_v19  ;;  %1378 = vmatmul.msk.f32.vlgmr.msra.gmra.mxu1 %vm92_vm1, %v661_v19  ;;  %v1381_v19 = vld [vmem:[%s2013_s0 + $0xa] sm:$0x3] }
 0x908   :  { %v591_v21 = vpop.permute.xlu1 %590 }
 0x909   :  { %1368 = vst.msk [vmem:[%s2020_s7 + $0x6] sm:$0x3] %vm70_vm0, %v591_v21  ;;  %1374 = vmatmul.msk.f32.vlgmr.msra.gmra.mxu0 %vm92_vm1, %v591_v21 }
 0x976   :  { %v756_v18 = vpop.f32.mrf.mxu1 }
 0x977   :  { %v779_v2 = vadd.f32 %v756_v18, %v1689_v16  ;;  %v759_v14 = vadd.f32 %v1377_v23, %v756_v18 }
 0x979   :  { %781 = vrot.lane.b32.xlu1 %v779_v2, %s1536_s27  ;;  %v1379_v0 = vmul.f32 -1.442695, %v759_v14  ;;  %v1385_v2 = vld [vmem:[%s2014_s1 + $0x4] sm:$0x3] }
 0x97b   :  { %1461 = vpow2.f32 %v1379_v0 }
 0x981   :  { %v1462_v5 = vpop.eup %1461 }
 0x982   :  { %v763_v3 = vadd.f32 1.0, %v1462_v5 }
 0x984   :  { %1463 = vrcp.f32 %v763_v3  ;;  %v775_v29 = vand.u32 2147483648, %v763_v3  ;;  %vm769_vm7 = vweird.f32 %v763_v3  ;;  %v773_v30 = vand.u32 2147483647, %v763_v3 }
 0x986   :  { %v686_v17 = vpop.f32.mrf.mxu0  ;;  %v776_v33 = vor.u32 1.1754944e-38, %v775_v29  ;;  %vm774_vm9 = vcmp.eq.f32.partialorder %v773_v30, 8.507059e+37 }
 0x987   :  { %v709_v22 = vadd.f32 %v686_v17, %v1685_v13  ;;  %v689_v8 = vadd.f32 %v1373_v1, %v686_v17 }
 0x989   :  { %711 = vrot.lane.b32.xlu0 %v709_v22, %s1536_s27  ;;  %v1375_v20 = vmul.f32 -1.442695, %v689_v8 }
 0x98a   :  { %v1464_v4 = vpop.eup %1463 }
 0x98b   :  { %1465 = vpow2.f32 %v1375_v20  ;;  %v765_v9 = vmul.f32 %v1464_v4, %v763_v3  ;;  %vm770_vm6 = vweird.f32 %v1464_v4 }
 0x98c   :  { %vm771_vm8 = vmor %vm769_vm7, %vm770_vm6 }
 0x98d   :  { %v766_v25 = vsub.f32 1.0, %v765_v9 }
 0x98f   :  { %v767_v26 = vmul.f32 %v1464_v4, %v766_v25 }
 0x991   :  { %v1466_v6 = vpop.eup %1465  ;;  %v768_v27 = vadd.f32 %v1464_v4, %v767_v26 }
 0x992   :  { %v693_v24 = vadd.f32 1.0, %v1466_v6 }
 0x993   :  { %v772_v31 = vsel %vm771_vm8, %v1464_v4, %v768_v27 }
 0x994   :  { %1467 = vrcp.f32 %v693_v24  ;;  %v777_v35 = vsel %vm774_vm9, %v776_v33, %v772_v31  ;;  %v705_v40 = vand.u32 2147483648, %v693_v24  ;;  %vm699_vm11 = vweird.f32 %v693_v24 }
 0x995   :  { %v703_v41 = vand.u32 2147483647, %v693_v24  ;;  %v791_v53 = vsub.f32 1.0, %v777_v35  ;;  %v797_v55 = vmul.f32 %v777_v35, %v1836_v11 }
 0x996   :  { %v706_v43 = vor.u32 1.1754944e-38, %v705_v40 }
 0x997   :  { %vm704_vm13 = vcmp.eq.f32.partialorder %v703_v41, 8.507059e+37 }
 0x99a   :  { %v1468_v28 = vpop.eup %1467 }
 0x99b   :  { %v695_v32 = vmul.f32 %v1468_v28, %v693_v24  ;;  %vm700_vm10 = vweird.f32 %v1468_v28 }
 0x99c   :  { %vm701_vm12 = vmor %vm699_vm11, %vm700_vm10 }
 0x99d   :  { %v696_v37 = vsub.f32 1.0, %v695_v32 }
 0x99f   :  { %v697_v38 = vmul.f32 %v1468_v28, %v696_v37 }
 0x9a1   :  { %v698_v39 = vadd.f32 %v1468_v28, %v697_v38 }
 0x9a3   :  { %v702_v42 = vsel %vm701_vm12, %v1468_v28, %v698_v39 }
 0x9a4   :  { %v707_v45 = vsel %vm704_vm13, %v706_v43, %v702_v42 }
 0x9a5   :  { %v721_v58 = vsub.f32 1.0, %v707_v45  ;;  %v727_v60 = vmul.f32 %v707_v45, %v1831_v63 }
 0x9eb   :  { %v782_v34 = vpop.permute.xlu1 %781 }
 0x9ec   :  { %v784_v36 = vmul.f32 %v782_v34, %v777_v35 }
 0x9ee   :  { %786 = vrot.lane.b32.xlu0 %v784_v36, %s1536_s27 }
 0x9fb   :  { %v712_v44 = vpop.permute.xlu0 %711 }
 0x9fc   :  { %v714_v46 = vmul.f32 %v712_v44, %v707_v45 }
 0x9fe   :  { %716 = vrot.lane.b32.xlu2 %v714_v46, %s1536_s27 }
 0xa58   :  { %v717_v47 = vpop.permute.xlu2 %716 }
 0xa59   :  { %v719_v48 = vadd.f32 %v1373_v1, %v717_v47 }
 0xa5b   :  { %1469 = vtanh.f32 %v719_v48 }
 0xa60   :  { %v787_v49 = vpop.permute.xlu0 %786 }
 0xa61   :  { %v1470_v50 = vpop.eup %1469  ;;  %v789_v51 = vadd.f32 %v1377_v23, %v787_v49 }
 0xa62   :  { %723 = vrot.lane.b32.xlu1 %v1470_v50, %s1538_s12 }
 0xa63   :  { %1471 = vtanh.f32 %v789_v51 }
 0xa69   :  { %v1472_v52 = vpop.eup %1471 }
 0xa6a   :  { %793 = vrot.lane.b32.xlu2 %v1472_v52, %s1538_s12 }
 0xac4   :  { %v794_v54 = vpop.permute.xlu2 %793 }
 0xac5   :  { %v796_v56 = vmul.f32 %v794_v54, %v791_v53 }
 0xac7   :  { %v1865_v57 = vadd.f32 %v797_v55, %v796_v56 }
 0xac9   :  { %800 = vrot.lane.b32.xlu1 %v1865_v57, %s1538_s12 }
 0xad4   :  { %v724_v59 = vpop.permute.xlu1 %723 }
 0xad5   :  { %v726_v61 = vmul.f32 %v724_v59, %v721_v58 }
 0xad7   :  { %v1870_v62 = vadd.f32 %v727_v60, %v726_v61 }
 0xad9   :  { %730 = vrot.lane.b32.xlu0 %v1870_v62, %s1538_s12 }
 0xb3b   :  { %v801_v7 = vpop.permute.xlu1 %800 }
 0xb3c   :  { %1380 = vst.msk [vmem:[%s2021_s8 + $0x6] sm:$0x3] %vm70_vm0, %v801_v7  ;;  %1386 = vmatmul.msk.f32.vlgmr.msra.gmra.mxu3 %vm92_vm1, %v801_v7  ;;  %v1393_v7 = vld [vmem:[%s2014_s1 + $0x2] sm:$0x3] }
 0xb4b   :  { %v731_v10 = vpop.permute.xlu0 %730 }
 0xb4c   :  { %1376 = vst.msk [vmem:[%s2020_s7 + $0x8] sm:$0x3] %vm70_vm0, %v731_v10  ;;  %1382 = vmatmul.msk.f32.vlgmr.msra.gmra.mxu2 %vm92_vm1, %v731_v10 }
 0xbbf   :  { %v896_v63 = vpop.f32.mrf.mxu3 }
 0xbc0   :  { %v919_v12 = vadd.f32 %v896_v63, %v1689_v16  ;;  %v899_v17 = vadd.f32 %v1385_v2, %v896_v63 }
 0xbc2   :  { %921 = vrot.lane.b32.xlu0 %v919_v12, %s1536_s27  ;;  %v1387_v22 = vmul.f32 -1.442695, %v899_v17  ;;  %v1389_v12 = vld [vmem:[%s2013_s0 + $0xc] sm:$0x3] }
 0xbcf   :  { %v826_v15 = vpop.f32.mrf.mxu2 }
 0xbd0   :  { %v849_v11 = vadd.f32 %v826_v15, %v1685_v13  ;;  %v829_v21 = vadd.f32 %v1381_v19, %v826_v15 }
 0xbd2   :  { %851 = vrot.lane.b32.xlu2 %v849_v11, %s1536_s27  ;;  %v1383_v18 = vmul.f32 -1.442695, %v829_v21 }
 0xbd4   :  { %1473 = vpow2.f32 %v1383_v18 }
 0xbd5   :  { %1475 = vpow2.f32 %v1387_v22 }
 0xbda   :  { %v1474_v23 = vpop.eup %1473 }
 0xbdb   :  { %v833_v14 = vadd.f32 1.0, %v1474_v23  ;;  %v1476_v0 = vpop.eup %1475 }
 0xbdc   :  { %v903_v1 = vadd.f32 1.0, %v1476_v0 }
 0xbdd   :  { %1477 = vrcp.f32 %v833_v14  ;;  %v845_v25 = vand.u32 2147483648, %v833_v14  ;;  %vm839_vm15 = vweird.f32 %v833_v14  ;;  %v843_v26 = vand.u32 2147483647, %v833_v14 }
 0xbde   :  { %1479 = vrcp.f32 %v903_v1  ;;  %v915_v34 = vand.u32 2147483648, %v903_v1  ;;  %vm909_vm5 = vweird.f32 %v903_v1  ;;  %v913_v35 = vand.u32 2147483647, %v903_v1 }
 0xbdf   :  { %v846_v29 = vor.u32 1.1754944e-38, %v845_v25  ;;  %vm844_vm3 = vcmp.eq.f32.partialorder %v843_v26, 8.507059e+37 }
 0xbe0   :  { %v916_v37 = vor.u32 1.1754944e-38, %v915_v34  ;;  %vm914_vm7 = vcmp.eq.f32.partialorder %v913_v35, 8.507059e+37 }
 0xbe3   :  { %v1478_v5 = vpop.eup %1477 }
 0xbe4   :  { %v835_v8 = vmul.f32 %v1478_v5, %v833_v14  ;;  %v1480_v20 = vpop.eup %1479  ;;  %vm840_vm14 = vweird.f32 %v1478_v5 }
 0xbe5   :  { %v905_v6 = vmul.f32 %v1480_v20, %v903_v1  ;;  %vm841_vm2 = vmor %vm839_vm15, %vm840_vm14  ;;  %vm910_vm4 = vweird.f32 %v1480_v20 }
 0xbe6   :  { %v836_v3 = vsub.f32 1.0, %v835_v8  ;;  %vm911_vm6 = vmor %vm909_vm5, %vm910_vm4 }
 0xbe7   :  { %v906_v24 = vsub.f32 1.0, %v905_v6 }
 0xbe8   :  { %v837_v4 = vmul.f32 %v1478_v5, %v836_v3 }
 0xbe9   :  { %v907_v28 = vmul.f32 %v1480_v20, %v906_v24 }
 0xbea   :  { %v838_v9 = vadd.f32 %v1478_v5, %v837_v4 }
 0xbeb   :  { %v908_v33 = vadd.f32 %v1480_v20, %v907_v28 }
 0xbec   :  { %v842_v27 = vsel %vm841_vm2, %v1478_v5, %v838_v9 }
 0xbed   :  { %v847_v30 = vsel %vm844_vm3, %v846_v29, %v842_v27  ;;  %v912_v36 = vsel %vm911_vm6, %v1480_v20, %v908_v33 }
 0xbee   :  { %v917_v39 = vsel %vm914_vm7, %v916_v37, %v912_v36  ;;  %v861_v52 = vsub.f32 1.0, %v847_v30  ;;  %v867_v54 = vmul.f32 %v847_v30, %v1870_v62 }
 0xbef   :  { %v931_v47 = vsub.f32 1.0, %v917_v39  ;;  %v937_v49 = vmul.f32 %v917_v39, %v1865_v57 }
 0xc2c   :  { %v852_v31 = vpop.permute.xlu2 %851 }
 0xc2d   :  { %v854_v32 = vmul.f32 %v852_v31, %v847_v30 }
 0xc2f   :  { %856 = vrot.lane.b32.xlu1 %v854_v32, %s1536_s27 }
 0xc34   :  { %v922_v38 = vpop.permute.xlu0 %921 }
 0xc35   :  { %v924_v40 = vmul.f32 %v922_v38, %v917_v39 }
 0xc37   :  { %926 = vrot.lane.b32.xlu2 %v924_v40, %s1536_s27 }
 0xc91   :  { %v927_v41 = vpop.permute.xlu2 %926 }
 0xc92   :  { %v929_v42 = vadd.f32 %v1385_v2, %v927_v41 }
 0xc94   :  { %1481 = vtanh.f32 %v929_v42 }
 0xc9a   :  { %v1482_v43 = vpop.eup %1481 }
 0xc9b   :  { %933 = vrot.lane.b32.xlu1 %v1482_v43, %s1538_s12 }
 0xca1   :  { %v857_v44 = vpop.permute.xlu1 %856 }
 0xca2   :  { %v859_v45 = vadd.f32 %v1381_v19, %v857_v44 }
 0xca4   :  { %1483 = vtanh.f32 %v859_v45 }
 0xcaa   :  { %v1484_v46 = vpop.eup %1483 }
 0xcab   :  { %863 = vrot.lane.b32.xlu0 %v1484_v46, %s1538_s12 }
 0xd0d   :  { %v934_v48 = vpop.permute.xlu1 %933 }
 0xd0e   :  { %v936_v50 = vmul.f32 %v934_v48, %v931_v47 }
 0xd10   :  { %v1899_v51 = vadd.f32 %v937_v49, %v936_v50 }
 0xd12   :  { %940 = vrot.lane.b32.xlu0 %v1899_v51, %s1538_s12 }
 0xd1d   :  { %v864_v53 = vpop.permute.xlu0 %863 }
 0xd1e   :  { %v866_v55 = vmul.f32 %v864_v53, %v861_v52 }
 0xd20   :  { %v1904_v56 = vadd.f32 %v867_v54, %v866_v55 }
 0xd22   :  { %870 = vrot.lane.b32.xlu2 %v1904_v56, %s1538_s12 }
 0xd7c   :  { %v871_v58 = vpop.permute.xlu2 %870 }
 0xd7d   :  { %1384 = vst.msk [vmem:[%s2020_s7 + $0xa] sm:$0x3] %vm70_vm0, %v871_v58  ;;  %1390 = vmatmul.msk.f32.vlgmr.msrb.gmra.mxu0 %vm92_vm1, %v871_v58  ;;  %v1155_v58 = vld [vmem:[%s2014_s1] sm:$0x3] }
 0xd84   :  { %v941_v57 = vpop.permute.xlu0 %940 }
 0xd85   :  { %1388 = vst.msk [vmem:[%s2021_s8 + $0x4] sm:$0x3] %vm70_vm0, %v941_v57  ;;  %1394 = vmatmul.msk.f32.vlgmr.msrb.gmra.mxu1 %vm92_vm1, %v941_v57 }
 0xdfa   :  { %v966_v59 = vpop.f32.mrf.mxu0 }
 0xdfb   :  { %v989_v60 = vadd.f32 %v966_v59, %v1685_v13  ;;  %v969_v11 = vadd.f32 %v1389_v12, %v966_v59 }
 0xdfd   :  { %991 = vrot.lane.b32.xlu1 %v989_v60, %s1536_s27  ;;  %v1391_v21 = vmul.f32 -1.442695, %v969_v11  ;;  %v1397_v60 = vld [vmem:[%s2013_s0 + $0xe] sm:$0x3] }
 0xe02   :  { %v1036_v61 = vpop.f32.mrf.mxu1 }
 0xe03   :  { %v1059_v62 = vadd.f32 %v1036_v61, %v1689_v16  ;;  %v1039_v10 = vadd.f32 %v1393_v7, %v1036_v61 }
 0xe05   :  { %1061 = vrot.lane.b32.xlu2 %v1059_v62, %s1536_s27  ;;  %v1395_v63 = vmul.f32 -1.442695, %v1039_v10 }
 0xe07   :  { %1485 = vpow2.f32 %v1395_v63 }
 0xe0d   :  { %v1486_v15 = vpop.eup %1485 }
 0xe0e   :  { %v1043_v19 = vadd.f32 1.0, %v1486_v15 }
 0xe10   :  { %1487 = vrcp.f32 %v1043_v19  ;;  %v1055_v5 = vand.u32 2147483648, %v1043_v19  ;;  %vm1049_vm9 = vweird.f32 %v1043_v19  ;;  %v1053_v8 = vand.u32 2147483647, %v1043_v19 }
 0xe11   :  { %1489 = vpow2.f32 %v1391_v21 }
 0xe12   :  { %v1056_v4 = vor.u32 1.1754944e-38, %v1055_v5  ;;  %vm1054_vm11 = vcmp.eq.f32.partialorder %v1053_v8, 8.507059e+37 }
 0xe16   :  { %v1488_v18 = vpop.eup %1487 }
 0xe17   :  { %v1490_v2 = vpop.eup %1489  ;;  %v1045_v17 = vmul.f32 %v1488_v18, %v1043_v19  ;;  %vm1050_vm8 = vweird.f32 %v1488_v18 }
 0xe18   :  { %v973_v22 = vadd.f32 1.0, %v1490_v2  ;;  %vm1051_vm10 = vmor %vm1049_vm9, %vm1050_vm8 }
 0xe19   :  { %v1046_v23 = vsub.f32 1.0, %v1045_v17 }
 0xe1a   :  { %1491 = vrcp.f32 %v973_v22  ;;  %v985_v28 = vand.u32 2147483648, %v973_v22  ;;  %vm979_vm13 = vweird.f32 %v973_v22  ;;  %v983_v29 = vand.u32 2147483647, %v973_v22 }
 0xe1b   :  { %v1047_v14 = vmul.f32 %v1488_v18, %v1046_v23 }
 0xe1c   :  { %v986_v31 = vor.u32 1.1754944e-38, %v985_v28  ;;  %vm984_vm15 = vcmp.eq.f32.partialorder %v983_v29, 8.507059e+37 }
 0xe1d   :  { %v1048_v0 = vadd.f32 %v1488_v18, %v1047_v14 }
 0xe1f   :  { %v1052_v3 = vsel %vm1051_vm10, %v1488_v18, %v1048_v0 }
 0xe20   :  { %v1492_v1 = vpop.eup %1491  ;;  %v1057_v6 = vsel %vm1054_vm11, %v1056_v4, %v1052_v3 }
 0xe21   :  { %v975_v20 = vmul.f32 %v1492_v1, %v973_v22  ;;  %vm980_vm12 = vweird.f32 %v1492_v1  ;;  %v1071_v46 = vsub.f32 1.0, %v1057_v6  ;;  %v1077_v48 = vmul.f32 %v1057_v6, %v1899_v51 }
 0xe22   :  { %vm981_vm14 = vmor %vm979_vm13, %vm980_vm12 }
 0xe23   :  { %v976_v25 = vsub.f32 1.0, %v975_v20 }
 0xe25   :  { %v977_v26 = vmul.f32 %v1492_v1, %v976_v25 }
 0xe27   :  { %v978_v27 = vadd.f32 %v1492_v1, %v977_v26 }
 0xe29   :  { %v982_v30 = vsel %vm981_vm14, %v1492_v1, %v978_v27 }
 0xe2a   :  { %v987_v33 = vsel %vm984_vm15, %v986_v31, %v982_v30 }
 0xe2b   :  { %v1001_v41 = vsub.f32 1.0, %v987_v33  ;;  %v1007_v43 = vmul.f32 %v987_v33, %v1904_v56 }
 0xe5f   :  { %v1062_v9 = vpop.permute.xlu2 %1061 }
 0xe60   :  { %v1064_v24 = vmul.f32 %v1062_v9, %v1057_v6 }
 0xe62   :  { %1066 = vrot.lane.b32.xlu1 %v1064_v24, %s1536_s27 }
 0xe6f   :  { %v992_v32 = vpop.permute.xlu1 %991 }
 0xe70   :  { %v994_v34 = vmul.f32 %v992_v32, %v987_v33  ;;  %v1235_v33 = vld [vmem:[%s2018_s5 + $0x18] sm:$0xff] }
 0xe71   :  { %1250 = vmatpush.msra.mxu0 %v1235_v33 }
 0xe72   :  { %996 = vrot.lane.b32.xlu0 %v994_v34, %s1536_s27  ;;  %v1234_v34 = vld [vmem:[%s2018_s5 + $0x10] sm:$0xff] }
 0xe73   :  { %1251 = vmatpush.msra.mxu0 %v1234_v34 }
 0xed4   :  { %v1067_v35 = vpop.permute.xlu1 %1066 }
 0xed5   :  { %v1069_v36 = vadd.f32 %v1393_v7, %v1067_v35  ;;  %v1233_v35 = vld [vmem:[%s2018_s5 + $0x8] sm:$0xff] }
 0xed6   :  { %1252 = vmatpush.msra.mxu0 %v1233_v35 }
 0xed7   :  { %1493 = vtanh.f32 %v1069_v36  ;;  %v1232_v36 = vld [vmem:[%s2018_s5] sm:$0xff] }
 0xed8   :  { %1253 = vmatpush.msra.mxu0 %v1232_v36 }
 0xedd   :  { %v1494_v37 = vpop.eup %1493 }
 0xede   :  { %1073 = vrot.lane.b32.xlu0 %v1494_v37, %s1538_s12 }
 0xee4   :  { %v997_v38 = vpop.permute.xlu0 %996 }
 0xee5   :  { %v999_v39 = vadd.f32 %v1389_v12, %v997_v38 }
 0xee7   :  { %1495 = vtanh.f32 %v999_v39 }
 0xeed   :  { %v1496_v40 = vpop.eup %1495 }
 0xeee   :  { %1003 = vrot.lane.b32.xlu2 %v1496_v40, %s1538_s12 }
 0xf48   :  { %v1004_v42 = vpop.permute.xlu2 %1003 }
 0xf49   :  { %v1006_v44 = vmul.f32 %v1004_v42, %v1001_v41 }
 0xf4b   :  { %v1933_v45 = vadd.f32 %v1007_v43, %v1006_v44 }
 0xf4d   :  { %1010 = vrot.lane.b32.xlu1 %v1933_v45, %s1538_s12 }
 0xf50   :  { %v1074_v47 = vpop.permute.xlu0 %1073 }
 0xf51   :  { %v1076_v49 = vmul.f32 %v1074_v47, %v1071_v46 }
 0xf53   :  { %v1938_v50 = vadd.f32 %v1077_v48, %v1076_v49  ;;  %v1231_v48 = vld [vmem:[%s2017_s4 + $0x18] sm:$0xff]  ;;  %v1230_v49 = vld [vmem:[%s2017_s4 + $0x10] sm:$0xff] }
 0xf54   :  { %1272 = vmatpush.msra.mxu1 %v1231_v48 }
 0xf55   :  { %1080 = vrot.lane.b32.xlu2 %v1938_v50, %s1538_s12 }
 0xf56   :  { %1273 = vmatpush.msra.mxu1 %v1230_v49 }
 0xfaf   :  { %v1081_v52 = vpop.permute.xlu2 %1080 }
 0xfb0   :  { %1396 = vst.msk [vmem:[%s2021_s8 + $0x2] sm:$0x3] %vm70_vm0, %v1081_v52  ;;  %1401 = vmatmul.msk.f32.vlgmr.msrb.gmra.mxu3 %vm92_vm1, %v1081_v52 }
 0xfbf   :  { %v1011_v53 = vpop.permute.xlu1 %1010 }
 0xfc0   :  { %1392 = vst.msk [vmem:[%s2020_s7 + $0xc] sm:$0x3] %vm70_vm0, %v1011_v53  ;;  %1398 = vmatmul.msk.f32.vlgmr.msrb.gmra.mxu2 %vm92_vm1, %v1011_v53 }
0x1033   :  { %v1175_v51 = vpop.f32.mrf.mxu3 }
0x1034   :  { %v1198_v54 = vadd.f32 %v1175_v51, %v1689_v16  ;;  %v1178_v57 = vadd.f32 %v1175_v51, %v1155_v58  ;;  %v1412_v51 = vld [vmem:[%s2019_s6] ss:$0 sm:$0xff] }
0x1036   :  { %1200 = vrot.lane.b32.xlu1 %v1198_v54, %s1536_s27  ;;  %v1402_v59 = vmul.f32 -1.442695, %v1178_v57 }
0x1038   :  { %1497 = vpow2.f32 %v1402_v59 }
0x103e   :  { %v1498_v61 = vpop.eup %1497 }
0x103f   :  { %v1182_v62 = vadd.f32 1.0, %v1498_v61 }
0x1041   :  { %1499 = vrcp.f32 %v1182_v62  ;;  %v1194_v18 = vand.u32 2147483648, %v1182_v62  ;;  %vm1188_vm3 = vweird.f32 %v1182_v62  ;;  %v1192_v2 = vand.u32 2147483647, %v1182_v62 }
0x1043   :  { %v1106_v55 = vpop.f32.mrf.mxu2  ;;  %v1195_v23 = vor.u32 1.1754944e-38, %v1194_v18  ;;  %vm1193_vm5 = vcmp.eq.f32.partialorder %v1192_v2, 8.507059e+37 }
0x1044   :  { %v1129_v56 = vadd.f32 %v1106_v55, %v1685_v13  ;;  %v1109_v16 = vadd.f32 %v1397_v60, %v1106_v55 }
0x1046   :  { %1131 = vrot.lane.b32.xlu0 %v1129_v56, %s1536_s27  ;;  %v1399_v7 = vmul.f32 -1.442695, %v1109_v16 }
0x1047   :  { %v1500_v13 = vpop.eup %1499 }
0x1048   :  { %1501 = vpow2.f32 %v1399_v7  ;;  %v1184_v63 = vmul.f32 %v1500_v13, %v1182_v62  ;;  %vm1189_vm2 = vweird.f32 %v1500_v13 }
0x1049   :  { %vm1190_vm4 = vmor %vm1188_vm3, %vm1189_vm2 }
0x104a   :  { %v1185_v15 = vsub.f32 1.0, %v1184_v63 }
0x104c   :  { %v1186_v11 = vmul.f32 %v1500_v13, %v1185_v15 }
0x104e   :  { %v1502_v10 = vpop.eup %1501  ;;  %v1187_v19 = vadd.f32 %v1500_v13, %v1186_v11 }
0x104f   :  { %v1113_v12 = vadd.f32 1.0, %v1502_v10 }
0x1050   :  { %v1191_v17 = vsel %vm1190_vm4, %v1500_v13, %v1187_v19 }
0x1051   :  { %1503 = vrcp.f32 %v1113_v12  ;;  %v1196_v0 = vsel %vm1193_vm5, %v1195_v23, %v1191_v17  ;;  %v1125_v20 = vand.u32 2147483648, %v1113_v12  ;;  %vm1119_vm7 = vweird.f32 %v1113_v12 }
0x1052   :  { %v1123_v4 = vand.u32 2147483647, %v1113_v12  ;;  %v1210_v37 = vsub.f32 1.0, %v1196_v0  ;;  %v1216_v39 = vmul.f32 %v1196_v0, %v1938_v50  ;;  %v1229_v50 = vld [vmem:[%s2017_s4 + $0x8] sm:$0xff] }
0x1053   :  { %v1126_v9 = vor.u32 1.1754944e-38, %v1125_v20  ;;  %1274 = vmatpush.msra.mxu1 %v1229_v50 }
0x1054   :  { %vm1124_vm9 = vcmp.eq.f32.partialorder %v1123_v4, 8.507059e+37 }
0x1057   :  { %v1504_v21 = vpop.eup %1503 }
0x1058   :  { %v1115_v22 = vmul.f32 %v1504_v21, %v1113_v12  ;;  %vm1120_vm6 = vweird.f32 %v1504_v21 }
0x1059   :  { %vm1121_vm8 = vmor %vm1119_vm7, %vm1120_vm6 }
0x105a   :  { %v1116_v5 = vsub.f32 1.0, %v1115_v22 }
0x105c   :  { %v1117_v8 = vmul.f32 %v1504_v21, %v1116_v5 }
0x105e   :  { %v1118_v3 = vadd.f32 %v1504_v21, %v1117_v8 }
0x1060   :  { %v1122_v6 = vsel %vm1121_vm8, %v1504_v21, %v1118_v3 }
0x1061   :  { %v1127_v25 = vsel %vm1124_vm9, %v1126_v9, %v1122_v6 }
0x1062   :  { %v1141_v42 = vsub.f32 1.0, %v1127_v25  ;;  %v1147_v44 = vmul.f32 %v1127_v25, %v1933_v45  ;;  %v1228_v45 = vld [vmem:[%s2017_s4] sm:$0xff] }
0x1063   :  { %1275 = vmatpush.msra.mxu1 %v1228_v45 }
0x10a8   :  { %v1201_v14 = vpop.permute.xlu1 %1200 }
0x10a9   :  { %v1203_v1 = vmul.f32 %v1201_v14, %v1196_v0 }
0x10ab   :  { %1205 = vrot.lane.b32.xlu0 %v1203_v1, %s1536_s27 }
0x10b8   :  { %v1132_v24 = vpop.permute.xlu0 %1131 }
0x10b9   :  { %v1134_v26 = vmul.f32 %v1132_v24, %v1127_v25 }
0x10bb   :  { %1136 = vrot.lane.b32.xlu2 %v1134_v26, %s1536_s27 }
0x1115   :  { %v1137_v27 = vpop.permute.xlu2 %1136 }
0x1116   :  { %v1139_v28 = vadd.f32 %v1397_v60, %v1137_v27 }
0x1118   :  { %1505 = vtanh.f32 %v1139_v28 }
0x111d   :  { %v1206_v29 = vpop.permute.xlu0 %1205 }
0x111e   :  { %v1506_v30 = vpop.eup %1505  ;;  %v1208_v31 = vadd.f32 %v1206_v29, %v1155_v58 }
0x111f   :  { %1143 = vrot.lane.b32.xlu1 %v1506_v30, %s1538_s12 }
0x1120   :  { %1507 = vtanh.f32 %v1208_v31 }
0x1126   :  { %v1508_v32 = vpop.eup %1507 }
0x1127   :  { %1212 = vrot.lane.b32.xlu2 %v1508_v32, %s1538_s12 }
0x1181   :  { %v1213_v38 = vpop.permute.xlu2 %1212 }
0x1182   :  { %v1215_v40 = vmul.f32 %v1213_v38, %v1210_v37 }
0x1184   :  { %v1217_v41 = vadd.f32 %v1216_v39, %v1215_v40 }
0x1186   :  { %1219 = vrot.lane.b32.xlu1 %v1217_v41, %s1538_s12 }
0x1191   :  { %v1144_v43 = vpop.permute.xlu1 %1143 }
0x1192   :  { %v1146_v46 = vmul.f32 %v1144_v43, %v1141_v42 }
0x1194   :  { %v1148_v47 = vadd.f32 %v1147_v44, %v1146_v46 }
0x1196   :  { %1150 = vrot.lane.b32.xlu0 %v1148_v47, %s1538_s12 }
0x11f8   :  { %v1220_v52 = vpop.permute.xlu1 %1219 }
0x11f9   :  { %1222 = vst.msk [vmem:[%s2021_s8] sm:$0x3] %vm70_vm0, %v1220_v52  ;;  %1403 = vmatmul.msk.f32.vlgmr.msra.gmra.mxu0 %vm92_vm1, %v1220_v52  ;;  %s1539_s8 = smov [#allocation4]  }
0x11fa   :  { %1224 = vst.msk [vmem:[#allocation3] sm:$0x3] %vm70_vm0, %v1220_v52  ;;  %s1303_s22 = sshll.u32 %s1539_s8, 4  ;;  %s1304_s22 = int_to_ptr.vmem [resolvable:$true] %s1303_s22 }
0x1208   :  { %v1151_v53 = vpop.permute.xlu0 %1150 }
0x1209   :  { %1400 = vst.msk [vmem:[%s2020_s7 + $0xe] sm:$0x3] %vm70_vm0, %v1151_v53  ;;  %1404 = vmatmul.msk.f32.vlgmr.msra.gmra.mxu1 %vm92_vm1, %v1151_v53 }
0x120a   :  { %1223 = vst.msk [vmem:[#allocation2] sm:$0x3] %vm70_vm0, %v1151_v53 }
0x1276   :  { %v1255_v54 = vpop.f32.mrf.mxu0 }
0x1286   :  { %v1277_v55 = vpop.f32.mrf.mxu1 }
0x1287   :  { %v1278_v56 = vadd.f32 %v1277_v55, %v1255_v54 }
0x1289   :  { %v1284_v58 = vadd.f32 %v1412_v51, %v1278_v56 }
0x128b   :  { %1285 = vst.msk [vmem:[#allocation4] sm:$0x3] %vm70_vm0, %v1284_v58 }
0x128c   :  { %1308 = dma.vmem_to_hbm [thread:$0]  %s1304_s22, 32, %s1306_s25, [#allocation5]  }
0x128d   :  { %1533 = dma.done.wait [#allocation5], 32  }
0x128e   :  { %1534 = vsyncadd [#allocation5], 4294967264 }
0x128f   :  { %1323 = vsyncpa [#allocation5], 1 }

</bundles_post_ra>
